<compile_context>
chip_gen: v7x
topology: tpu7x:2x2x1
jax: 0.10.0
libtpu: 0.0.40
codegen_flags: <defaults>
</compile_context>

<pallas_src>
import functools

import jax
import jax.numpy as jnp
from jax import lax
from jax.experimental import pallas as pl
from jax.experimental.pallas import tpu as pltpu

BN_EPS = 1e-5


# ---------------------------------------------------------------------------
# Stage 1: conv1 (1x1) + per-channel sum / sum-of-squares for BN1.
# Grid: (N,).  Stats outputs keep a constant block index -> VMEM-resident
# accumulators across the grid, written back once.
# ---------------------------------------------------------------------------
def _conv1x1_stats_kernel(x_ref, w_ref, y_ref, sum_ref, sq_ref):
    @pl.when(pl.program_id(0) == 0)
    def _init():
        sum_ref[...] = jnp.zeros_like(sum_ref)
        sq_ref[...] = jnp.zeros_like(sq_ref)

    x = x_ref[0].astype(jnp.bfloat16)                       # (Cin, HW)
    y = jnp.dot(w_ref[...], x, preferred_element_type=jnp.float32)  # (P, HW)
    sum_ref[...] += jnp.sum(y, axis=1, keepdims=True)
    sq_ref[...] += jnp.sum(y * y, axis=1, keepdims=True)
    y_ref[...] = y[None]


# ---------------------------------------------------------------------------
# Stage 2: folded BN1-affine + ReLU -> 3x3 conv (stride 1, pad 1) as a single
# fused im2col matmul + BN2 stats.  Grid: (N,) -- one full image per step.
# ---------------------------------------------------------------------------
def _bn_relu_conv3x3_stats_kernel(y_in_ref, scale_ref, shift_ref, w_ref,
                                  y_ref, sum_ref, sq_ref, *, h, w):
    @pl.when(pl.program_id(0) == 0)
    def _init():
        sum_ref[...] = jnp.zeros_like(sum_ref)
        sq_ref[...] = jnp.zeros_like(sq_ref)

    p = y_in_ref.shape[1]

    # BN1 as folded per-channel affine (column broadcast), then ReLU, then the
    # bf16 cast (same place the reference casts for the conv).
    z = jnp.maximum(y_in_ref[0] * scale_ref[...] + shift_ref[...], 0.0)
    z = z.astype(jnp.bfloat16).reshape(p, h, w)

    # Zero-pad spatially as a *value* (concat), not via a padded VMEM scratch.
    zr = jnp.zeros((p, 1, w), jnp.bfloat16)
    zp = jnp.concatenate([zr, z, zr], axis=1)               # (P, H+2, W)
    zc = jnp.zeros((p, h + 2, 1), jnp.bfloat16)
    zp = jnp.concatenate([zc, zp, zc], axis=2)              # (P, H+2, W+2)

    # im2col: 9 shifted views stacked on the channel axis -> one matmul with
    # K = 9*P instead of nine K=P matmuls.
    patches = jnp.concatenate(
        [zp[:, dy:dy + h, dx:dx + w] for dy in range(3) for dx in range(3)],
        axis=0).reshape(9 * p, h * w)                       # (9P, HW) bf16

    y = jnp.dot(w_ref[...], patches,
                preferred_element_type=jnp.float32)         # (P, HW) f32
    sum_ref[...] += jnp.sum(y, axis=1, keepdims=True)
    sq_ref[...] += jnp.sum(y * y, axis=1, keepdims=True)
    y_ref[...] = y[None]


# ---------------------------------------------------------------------------
# Stage 3: folded BN2-affine + ReLU -> conv3 (1x1) + BN3 stats.  Grid: (N,).
# ---------------------------------------------------------------------------
def _bn_relu_conv1x1_stats_kernel(y_in_ref, scale_ref, shift_ref, w_ref,
                                  y_ref, sum_ref, sq_ref):
    @pl.when(pl.program_id(0) == 0)
    def _init():
        sum_ref[...] = jnp.zeros_like(sum_ref)
        sq_ref[...] = jnp.zeros_like(sq_ref)

    z = jnp.maximum(y_in_ref[0] * scale_ref[...] + shift_ref[...], 0.0)
    y = jnp.dot(w_ref[...], z.astype(jnp.bfloat16),
                preferred_element_type=jnp.float32)         # (Cout, HW)
    sum_ref[...] += jnp.sum(y, axis=1, keepdims=True)
    sq_ref[...] += jnp.sum(y * y, axis=1, keepdims=True)
    y_ref[...] = y[None]


# ---------------------------------------------------------------------------
# Stage 4: folded BN3-affine + residual add + ReLU.  Pure elementwise on
# lane-dense (1, C, HW) blocks; grid axis "parallel".
# ---------------------------------------------------------------------------
def _bn_residual_relu_kernel(y_in_ref, x_ref, scale_ref, shift_ref, o_ref):
    o_ref[...] = jnp.maximum(
        y_in_ref[...] * scale_ref[...] + shift_ref[...] + x_ref[...], 0.0)


def _fold_bn(sum_col, sq_col, count, gamma, beta):
    """Fold batch statistics + gamma/beta into per-channel scale/shift columns."""
    mean = sum_col[:, 0] / count
    var = sq_col[:, 0] / count - mean * mean     # biased variance (BN training)
    scale = gamma.reshape(-1) * lax.rsqrt(var + BN_EPS)
    shift = beta.reshape(-1) - mean * scale
    return scale.reshape(-1, 1), shift.reshape(-1, 1)


@jax.jit
def bottleneck_forward(x_nchw, params):
    """Bottleneck forward (stride=1, downsample=None).  x_nchw: (N, C, H, W)."""
    w1, g1, b1, w2, g2, b2, w3, g3, b3 = params
    n, cin, hgt, wd = x_nchw.shape
    p = w1.shape[1]
    cout = w3.shape[1]
    hw = hgt * wd
    assert cin == cout, "residual add requires inplanes == planes * 4"
    assert w2.shape == (3, 3, p, p)

    # Keep NCHW; flatten spatial (free, contiguous reshape -- no transpose).
    x = x_nchw.astype(jnp.float32).reshape(n, cin, hw)

    # Weights as (Cout, K) matmul operands in bf16.
    w1t = jnp.transpose(w1).astype(jnp.bfloat16)                         # (P, Cin)
    w2m = jnp.transpose(w2, (3, 0, 1, 2)).reshape(p, 9 * p).astype(jnp.bfloat16)
    w3t = jnp.transpose(w3).astype(jnp.bfloat16)                         # (Cout, P)

    count = float(n * hw)
    arb = pltpu.CompilerParams(dimension_semantics=("arbitrary",))

    def act_spec(c):
        return pl.BlockSpec((1, c, hw), lambda i: (i, 0, 0))

    def const_spec(shape):
        return pl.BlockSpec(shape, lambda i: (0, 0))

    def stats_shapes(c):
        return [jax.ShapeDtypeStruct((c, 1), jnp.float32)] * 2

    # ---- stage 1: conv1 (1x1) + BN1 stats ---------------------------------
    y1, s1, q1 = pl.pallas_call(
        _conv1x1_stats_kernel,
        grid=(n,),
        in_specs=[act_spec(cin), const_spec((p, cin))],
        out_specs=[act_spec(p), const_spec((p, 1)), const_spec((p, 1))],
        out_shape=[jax.ShapeDtypeStruct((n, p, hw), jnp.float32)] + stats_shapes(p),
        compiler_params=arb,
    )(x, w1t)
    scale1, shift1 = _fold_bn(s1, q1, count, g1, b1)

    # ---- stage 2: BN1 + ReLU -> conv2 (3x3) + BN2 stats -------------------
    y2, s2, q2 = pl.pallas_call(
        functools.partial(_bn_relu_conv3x3_stats_kernel, h=hgt, w=wd),
        grid=(n,),
        in_specs=[act_spec(p), const_spec((p, 1)), const_spec((p, 1)),
                  const_spec((p, 9 * p))],
        out_specs=[act_spec(p), const_spec((p, 1)), const_spec((p, 1))],
        out_shape=[jax.ShapeDtypeStruct((n, p, hw), jnp.float32)] + stats_shapes(p),
        compiler_params=arb,
    )(y1, scale1, shift1, w2m)
    scale2, shift2 = _fold_bn(s2, q2, count, g2, b2)

    # ---- stage 3: BN2 + ReLU -> conv3 (1x1) + BN3 stats -------------------
    y3, s3, q3 = pl.pallas_call(
        _bn_relu_conv1x1_stats_kernel,
        grid=(n,),
        in_specs=[act_spec(p), const_spec((p, 1)), const_spec((p, 1)),
                  const_spec((cout, p))],
        out_specs=[act_spec(cout), const_spec((cout, 1)), const_spec((cout, 1))],
        out_shape=[jax.ShapeDtypeStruct((n, cout, hw), jnp.float32)]
                  + stats_shapes(cout),
        compiler_params=arb,
    )(y2, scale2, shift2, w3t)
    scale3, shift3 = _fold_bn(s3, q3, count, g3, b3)

    # ---- stage 4: BN3 + residual + ReLU (elementwise, "parallel") ---------
    out_flat = pl.pallas_call(
        _bn_residual_relu_kernel,
        grid=(n,),
        in_specs=[act_spec(cout), act_spec(cin),
                  const_spec((cout, 1)), const_spec((cout, 1))],
        out_specs=act_spec(cout),
        out_shape=jax.ShapeDtypeStruct((n, cout, hw), jnp.float32),
        compiler_params=pltpu.CompilerParams(dimension_semantics=("parallel",)),
    )(y3, x, scale3, shift3)

    return out_flat.reshape(n, cout, hgt, wd)        # already NCHW


def bottleneck_reference(x_nchw, params):
    """Pure-JAX reference mirroring the PyTorch forward (training-mode BN) and
    the kernel's MXU precision (bf16 matmul inputs, f32 accumulation)."""
    w1, g1, b1, w2, g2, b2, w3, g3, b3 = params
    bf = jnp.bfloat16
    x = jnp.transpose(x_nchw, (0, 2, 3, 1)).astype(jnp.float32)

    def bn(y, gamma, beta):
        mean = jnp.mean(y, axis=(0, 1, 2), keepdims=True)
        var = jnp.mean((y - mean) ** 2, axis=(0, 1, 2), keepdims=True)
        return (y - mean) * lax.rsqrt(var + BN_EPS) * gamma + beta

    y = jnp.einsum('nhwc,cp->nhwp', x.astype(bf), w1.astype(bf),
                   preferred_element_type=jnp.float32)
    y = jax.nn.relu(bn(y, g1, b1))
    y = lax.conv_general_dilated(y.astype(bf), w2.astype(bf), (1, 1),
                                 ((1, 1), (1, 1)),
                                 dimension_numbers=('NHWC', 'HWIO', 'NHWC'),
                                 preferred_element_type=jnp.float32)
    y = jax.nn.relu(bn(y, g2, b2))
    y = jnp.einsum('nhwc,cp->nhwp', y.astype(bf), w3.astype(bf),
                   preferred_element_type=jnp.float32)
    y = bn(y, g3, b3)
    y = jax.nn.relu(y + x)
    return jnp.transpose(y, (0, 3, 1, 2))


if __name__ == "__main__":
    # inplanes = 16, planes = 4 (expansion 4 => residual shapes match),
    # batch = 2, spatial = 16x16.
    inplanes, planes = 16, 4
    N, H, W = 2, 16, 16

    key = jax.random.PRNGKey(0)
    ks = jax.random.split(key, 8)

    x = jax.random.normal(ks[0], (N, inplanes, H, W), jnp.float32)

    # Weight layout: 1x1 convs as (Cin, Cout) matmul weights; conv2 as
    # HWIO = (3, 3, planes, planes).
    w1 = 0.2 * jax.random.normal(ks[1], (inplanes, planes), jnp.float32)
    w2 = 0.2 * jax.random.normal(ks[2], (3, 3, planes, planes), jnp.float32)
    w3 = 0.2 * jax.random.normal(ks[3], (planes, planes * 4), jnp.float32)
    g1 = 1.0 + 0.1 * jax.random.normal(ks[4], (planes,), jnp.float32)
    b1 = 0.1 * jax.random.normal(ks[5], (planes,), jnp.float32)
    g2 = 1.0 + 0.1 * jax.random.normal(ks[6], (planes,), jnp.float32)
    b2 = 0.1 * jax.random.normal(ks[7], (planes,), jnp.float32)
    g3 = jnp.ones((planes * 4,), jnp.float32)
    b3 = jnp.zeros((planes * 4,), jnp.float32)

    params = (w1, g1, b1, w2, g2, b2, w3, g3, b3)

    out = jax.block_until_ready(bottleneck_forward(x, params))
    ref = jax.block_until_ready(bottleneck_reference(x, params))

    assert out.shape == (N, inplanes, H, W), out.shape
    max_err = float(jnp.max(jnp.abs(out - ref)))
    assert jnp.allclose(out, ref, rtol=1e-2, atol=1e-2), max_err

    print("KERNEL_OK")
</pallas_src>

<mosaic_0001>
module attributes {stable_mosaic.version = 11 : i64} {
  func.func @_conv1x1_stats_kernel(%arg0: i32, %arg1: memref<1x16x256xf32, #tpu.memory_space<vmem>>, %arg2: memref<4x16xbf16, #tpu.memory_space<vmem>>, %arg3: memref<1x4x256xf32, #tpu.memory_space<vmem>>, %arg4: memref<4x1xf32, #tpu.memory_space<vmem>>, %arg5: memref<4x1xf32, #tpu.memory_space<vmem>>) attributes {dimension_semantics = [#tpu.dimension_semantics<arbitrary>], iteration_bounds = array<i64: 2>, scalar_prefetch = 0 : i64, scratch_operands = 0 : i64, tpu.core_type = #tpu.core_type<tc>, window_params = [{transform_indices = @transform_0, window_bounds = array<i64: 1, 16, 256>}, {pipeline_mode = #tpu.pipeline_mode<synchronous>, transform_indices = @transform_1, window_bounds = array<i64: 4, 16>}, {transform_indices = @transform_2, window_bounds = array<i64: 1, 4, 256>}, {pipeline_mode = #tpu.pipeline_mode<synchronous>, transform_indices = @transform_3, window_bounds = array<i64: 4, 1>}, {pipeline_mode = #tpu.pipeline_mode<synchronous>, transform_indices = @transform_4, window_bounds = array<i64: 4, 1>}]} {
    %c0_i32 = arith.constant 0 : i32
    %0 = arith.cmpi eq, %arg0, %c0_i32 : i32
    %1 = arith.extui %0 : i1 to i32
    %c0_i32_0 = arith.constant 0 : i32
    %2 = arith.cmpi ne, %1, %c0_i32_0 : i32
    scf.if %2 {
      %cst_18 = arith.constant 0.000000e+00 : f32
      %21 = vector.broadcast %cst_18 : f32 to vector<4x1xf32>
      %c0_19 = arith.constant 0 : index
      %c0_20 = arith.constant 0 : index
      %22 = vector.load %arg4[%c0_19, %c0_20] : memref<4x1xf32, #tpu.memory_space<vmem>>, vector<4x1xf32>
      tpu.vector_store %arg4[%c0_19, %c0_20], %21 {strides = array<i32>} : memref<4x1xf32, #tpu.memory_space<vmem>>, vector<4x1xf32>,
      %cst_21 = arith.constant 0.000000e+00 : f32
      %23 = vector.broadcast %cst_21 : f32 to vector<4x1xf32>
      %c0_22 = arith.constant 0 : index
      %c0_23 = arith.constant 0 : index
      %24 = vector.load %arg5[%c0_22, %c0_23] : memref<4x1xf32, #tpu.memory_space<vmem>>, vector<4x1xf32>
      tpu.vector_store %arg5[%c0_22, %c0_23], %23 {strides = array<i32>} : memref<4x1xf32, #tpu.memory_space<vmem>>, vector<4x1xf32>,
    } else {
    }
    %c0 = arith.constant 0 : index
    %c0_1 = arith.constant 0 : index
    %c0_2 = arith.constant 0 : index
    %3 = vector.load %arg1[%c0, %c0_1, %c0_2] : memref<1x16x256xf32, #tpu.memory_space<vmem>>, vector<1x16x256xf32>
    %4 = vector.shape_cast %3 : vector<1x16x256xf32> to vector<16x256xf32>
    %5 = arith.truncf %4 : vector<16x256xf32> to vector<16x256xbf16>
    %c0_3 = arith.constant 0 : index
    %c0_4 = arith.constant 0 : index
    %6 = vector.load %arg2[%c0_3, %c0_4] : memref<4x16xbf16, #tpu.memory_space<vmem>>, vector<4x16xbf16>
    %cst = arith.constant dense<0.000000e+00> : vector<4x256xf32>
    %7 = tpu.matmul %6, %5, %cst {dimension_numbers = #tpu.dot_dimension_numbers<[1], [0], [0], [1], [0, 0, 1, 1], [], []>} : vector<4x16xbf16>, vector<16x256xbf16>, vector<4x256xf32> -> vector<4x256xf32>
    %c0_5 = arith.constant 0 : index
    %c0_6 = arith.constant 0 : index
    %8 = vector.load %arg4[%c0_5, %c0_6] : memref<4x1xf32, #tpu.memory_space<vmem>>, vector<4x1xf32>
    %cst_7 = arith.constant dense<0.000000e+00> : vector<4xf32>
    %9 = vector.multi_reduction <add>, %7, %cst_7 [1] : vector<4x256xf32> to vector<4xf32>
    %10 = vector.shape_cast %9 : vector<4xf32> to vector<4x1xf32>
    %11 = arith.addf %8, %10 : vector<4x1xf32>
    %c0_8 = arith.constant 0 : index
    %c0_9 = arith.constant 0 : index
    %12 = vector.load %arg4[%c0_8, %c0_9] : memref<4x1xf32, #tpu.memory_space<vmem>>, vector<4x1xf32>
    tpu.vector_store %arg4[%c0_8, %c0_9], %11 {strides = array<i32>} : memref<4x1xf32, #tpu.memory_space<vmem>>, vector<4x1xf32>,
    %c0_10 = arith.constant 0 : index
    %c0_11 = arith.constant 0 : index
    %13 = vector.load %arg5[%c0_10, %c0_11] : memref<4x1xf32, #tpu.memory_space<vmem>>, vector<4x1xf32>
    %14 = arith.mulf %7, %7 : vector<4x256xf32>
    %cst_12 = arith.constant dense<0.000000e+00> : vector<4xf32>
    %15 = vector.multi_reduction <add>, %14, %cst_12 [1] : vector<4x256xf32> to vector<4xf32>
    %16 = vector.shape_cast %15 : vector<4xf32> to vector<4x1xf32>
    %17 = arith.addf %13, %16 : vector<4x1xf32>
    %c0_13 = arith.constant 0 : index
    %c0_14 = arith.constant 0 : index
    %18 = vector.load %arg5[%c0_13, %c0_14] : memref<4x1xf32, #tpu.memory_space<vmem>>, vector<4x1xf32>
    tpu.vector_store %arg5[%c0_13, %c0_14], %17 {strides = array<i32>} : memref<4x1xf32, #tpu.memory_space<vmem>>, vector<4x1xf32>,
    %19 = vector.shape_cast %7 : vector<4x256xf32> to vector<1x4x256xf32>
    %c0_15 = arith.constant 0 : index
    %c0_16 = arith.constant 0 : index
    %c0_17 = arith.constant 0 : index
    %20 = vector.load %arg3[%c0_15, %c0_16, %c0_17] : memref<1x4x256xf32, #tpu.memory_space<vmem>>, vector<1x4x256xf32>
    tpu.vector_store %arg3[%c0_15, %c0_16, %c0_17], %19 {strides = array<i32>} : memref<1x4x256xf32, #tpu.memory_space<vmem>>, vector<1x4x256xf32>,
    return
  }
  func.func @transform_0(%arg0: i32) -> (i32, i32, i32) {
    %c0_i32 = arith.constant 0 : i32
    %c0_i32_0 = arith.constant 0 : i32
    %c0_i32_1 = arith.constant 0 : i32
    return %arg0, %c0_i32, %c0_i32_0 : i32, i32, i32
  }
  func.func @transform_1(%arg0: i32) -> (i32, i32) {
    %c0_i32 = arith.constant 0 : i32
    %c0_i32_0 = arith.constant 0 : i32
    %c0_i32_1 = arith.constant 0 : i32
    return %c0_i32, %c0_i32_0 : i32, i32
  }
  func.func @transform_2(%arg0: i32) -> (i32, i32, i32) {
    %c0_i32 = arith.constant 0 : i32
    %c0_i32_0 = arith.constant 0 : i32
    %c0_i32_1 = arith.constant 0 : i32
    return %arg0, %c0_i32, %c0_i32_0 : i32, i32, i32
  }
  func.func @transform_3(%arg0: i32) -> (i32, i32) {
    %c0_i32 = arith.constant 0 : i32
    %c0_i32_0 = arith.constant 0 : i32
    %c0_i32_1 = arith.constant 0 : i32
    return %c0_i32, %c0_i32_0 : i32, i32
  }
  func.func @transform_4(%arg0: i32) -> (i32, i32) {
    %c0_i32 = arith.constant 0 : i32
    %c0_i32_0 = arith.constant 0 : i32
    %c0_i32_1 = arith.constant 0 : i32
    return %c0_i32, %c0_i32_0 : i32, i32
  }
}

module attributes {stable_mosaic.version = 11 : i64} {
  func.func @_bn_relu_conv3x3_stats_kernel(%arg0: i32, %arg1: memref<1x4x256xf32, #tpu.memory_space<vmem>>, %arg2: memref<4x1xf32, #tpu.memory_space<vmem>>, %arg3: memref<4x1xf32, #tpu.memory_space<vmem>>, %arg4: memref<4x36xbf16, #tpu.memory_space<vmem>>, %arg5: memref<1x4x256xf32, #tpu.memory_space<vmem>>, %arg6: memref<4x1xf32, #tpu.memory_space<vmem>>, %arg7: memref<4x1xf32, #tpu.memory_space<vmem>>) attributes {dimension_semantics = [#tpu.dimension_semantics<arbitrary>], iteration_bounds = array<i64: 2>, scalar_prefetch = 0 : i64, scratch_operands = 0 : i64, tpu.core_type = #tpu.core_type<tc>, window_params = [{transform_indices = @transform_0, window_bounds = array<i64: 1, 4, 256>}, {pipeline_mode = #tpu.pipeline_mode<synchronous>, transform_indices = @transform_1, window_bounds = array<i64: 4, 1>}, {pipeline_mode = #tpu.pipeline_mode<synchronous>, transform_indices = @transform_2, window_bounds = array<i64: 4, 1>}, {pipeline_mode = #tpu.pipeline_mode<synchronous>, transform_indices = @transform_3, window_bounds = array<i64: 4, 36>}, {transform_indices = @transform_4, window_bounds = array<i64: 1, 4, 256>}, {pipeline_mode = #tpu.pipeline_mode<synchronous>, transform_indices = @transform_5, window_bounds = array<i64: 4, 1>}, {pipeline_mode = #tpu.pipeline_mode<synchronous>, transform_indices = @transform_6, window_bounds = array<i64: 4, 1>}]} {
    %c0_i32 = arith.constant 0 : i32
    %0 = arith.cmpi eq, %arg0, %c0_i32 : i32
    %1 = arith.extui %0 : i1 to i32
    %c0_i32_0 = arith.constant 0 : i32
    %2 = arith.cmpi ne, %1, %c0_i32_0 : i32
    scf.if %2 {
      %cst_25 = arith.constant 0.000000e+00 : f32
      %45 = vector.broadcast %cst_25 : f32 to vector<4x1xf32>
      %c0_26 = arith.constant 0 : index
      %c0_27 = arith.constant 0 : index
      %46 = vector.load %arg6[%c0_26, %c0_27] : memref<4x1xf32, #tpu.memory_space<vmem>>, vector<4x1xf32>
      tpu.vector_store %arg6[%c0_26, %c0_27], %45 {strides = array<i32>} : memref<4x1xf32, #tpu.memory_space<vmem>>, vector<4x1xf32>,
      %cst_28 = arith.constant 0.000000e+00 : f32
      %47 = vector.broadcast %cst_28 : f32 to vector<4x1xf32>
      %c0_29 = arith.constant 0 : index
      %c0_30 = arith.constant 0 : index
      %48 = vector.load %arg7[%c0_29, %c0_30] : memref<4x1xf32, #tpu.memory_space<vmem>>, vector<4x1xf32>
      tpu.vector_store %arg7[%c0_29, %c0_30], %47 {strides = array<i32>} : memref<4x1xf32, #tpu.memory_space<vmem>>, vector<4x1xf32>,
    } else {
    }
    %c0 = arith.constant 0 : index
    %c0_1 = arith.constant 0 : index
    %c0_2 = arith.constant 0 : index
    %3 = vector.load %arg1[%c0, %c0_1, %c0_2] : memref<1x4x256xf32, #tpu.memory_space<vmem>>, vector<1x4x256xf32>
    %4 = vector.shape_cast %3 : vector<1x4x256xf32> to vector<4x256xf32>
    %c0_3 = arith.constant 0 : index
    %c0_4 = arith.constant 0 : index
    %5 = vector.load %arg2[%c0_3, %c0_4] : memref<4x1xf32, #tpu.memory_space<vmem>>, vector<4x1xf32>
    %6 = vector.broadcast %5 : vector<4x1xf32> to vector<4x256xf32>
    %7 = arith.mulf %4, %6 : vector<4x256xf32>
    %c0_5 = arith.constant 0 : index
    %c0_6 = arith.constant 0 : index
    %8 = vector.load %arg3[%c0_5, %c0_6] : memref<4x1xf32, #tpu.memory_space<vmem>>, vector<4x1xf32>
    %9 = vector.broadcast %8 : vector<4x1xf32> to vector<4x256xf32>
    %10 = arith.addf %7, %9 : vector<4x256xf32>
    %cst = arith.constant 0.000000e+00 : f32
    %11 = vector.broadcast %cst : f32 to vector<4x256xf32>
    %12 = arith.maximumf %10, %11 : vector<4x256xf32>
    %13 = arith.truncf %12 : vector<4x256xf32> to vector<4x256xbf16>
    %14 = vector.shape_cast %13 : vector<4x256xbf16> to vector<4x16x16xbf16>
    %cst_7 = arith.constant 0.000000e+00 : bf16
    %15 = vector.broadcast %cst_7 : bf16 to vector<4x1x16xbf16>
    %16 = tpu.concatenate %15, %14, %15 in 1 : vector<4x1x16xbf16>, vector<4x16x16xbf16>, vector<4x1x16xbf16> -> vector<4x18x16xbf16>
    %cst_8 = arith.constant 0.000000e+00 : bf16
    %17 = vector.broadcast %cst_8 : bf16 to vector<4x18x1xbf16>
    %18 = tpu.concatenate %17, %16, %17 in 2 : vector<4x18x1xbf16>, vector<4x18x16xbf16>, vector<4x18x1xbf16> -> vector<4x18x18xbf16>
    %19 = vector.extract_strided_slice %18 {offsets = [0, 0, 0], sizes = [4, 16, 16], strides = [1, 1, 1]} : vector<4x18x18xbf16> to vector<4x16x16xbf16>
    %20 = vector.extract_strided_slice %18 {offsets = [0, 0, 1], sizes = [4, 16, 16], strides = [1, 1, 1]} : vector<4x18x18xbf16> to vector<4x16x16xbf16>
    %21 = vector.extract_strided_slice %18 {offsets = [0, 0, 2], sizes = [4, 16, 16], strides = [1, 1, 1]} : vector<4x18x18xbf16> to vector<4x16x16xbf16>
    %22 = vector.extract_strided_slice %18 {offsets = [0, 1, 0], sizes = [4, 16, 16], strides = [1, 1, 1]} : vector<4x18x18xbf16> to vector<4x16x16xbf16>
    %23 = vector.extract_strided_slice %18 {offsets = [0, 1, 1], sizes = [4, 16, 16], strides = [1, 1, 1]} : vector<4x18x18xbf16> to vector<4x16x16xbf16>
    %24 = vector.extract_strided_slice %18 {offsets = [0, 1, 2], sizes = [4, 16, 16], strides = [1, 1, 1]} : vector<4x18x18xbf16> to vector<4x16x16xbf16>
    %25 = vector.extract_strided_slice %18 {offsets = [0, 2, 0], sizes = [4, 16, 16], strides = [1, 1, 1]} : vector<4x18x18xbf16> to vector<4x16x16xbf16>
    %26 = vector.extract_strided_slice %18 {offsets = [0, 2, 1], sizes = [4, 16, 16], strides = [1, 1, 1]} : vector<4x18x18xbf16> to vector<4x16x16xbf16>
    %27 = vector.extract_strided_slice %18 {offsets = [0, 2, 2], sizes = [4, 16, 16], strides = [1, 1, 1]} : vector<4x18x18xbf16> to vector<4x16x16xbf16>
    %28 = tpu.concatenate %19, %20, %21, %22, %23, %24, %25, %26, %27 in 0 : vector<4x16x16xbf16>, vector<4x16x16xbf16>, vector<4x16x16xbf16>, vector<4x16x16xbf16>, vector<4x16x16xbf16>, vector<4x16x16xbf16>, vector<4x16x16xbf16>, vector<4x16x16xbf16>, vector<4x16x16xbf16> -> vector<36x16x16xbf16>
    %29 = vector.shape_cast %28 : vector<36x16x16xbf16> to vector<36x256xbf16>
    %c0_9 = arith.constant 0 : index
    %c0_10 = arith.constant 0 : index
    %30 = vector.load %arg4[%c0_9, %c0_10] : memref<4x36xbf16, #tpu.memory_space<vmem>>, vector<4x36xbf16>
    %cst_11 = arith.constant dense<0.000000e+00> : vector<4x256xf32>
    %31 = tpu.matmul %30, %29, %cst_11 {dimension_numbers = #tpu.dot_dimension_numbers<[1], [0], [0], [1], [0, 0, 1, 1], [], []>} : vector<4x36xbf16>, vector<36x256xbf16>, vector<4x256xf32> -> vector<4x256xf32>
    %c0_12 = arith.constant 0 : index
    %c0_13 = arith.constant 0 : index
    %32 = vector.load %arg6[%c0_12, %c0_13] : memref<4x1xf32, #tpu.memory_space<vmem>>, vector<4x1xf32>
    %cst_14 = arith.constant dense<0.000000e+00> : vector<4xf32>
    %33 = vector.multi_reduction <add>, %31, %cst_14 [1] : vector<4x256xf32> to vector<4xf32>
    %34 = vector.shape_cast %33 : vector<4xf32> to vector<4x1xf32>
    %35 = arith.addf %32, %34 : vector<4x1xf32>
    %c0_15 = arith.constant 0 : index
    %c0_16 = arith.constant 0 : index
    %36 = vector.load %arg6[%c0_15, %c0_16] : memref<4x1xf32, #tpu.memory_space<vmem>>, vector<4x1xf32>
    tpu.vector_store %arg6[%c0_15, %c0_16], %35 {strides = array<i32>} : memref<4x1xf32, #tpu.memory_space<vmem>>, vector<4x1xf32>,
    %c0_17 = arith.constant 0 : index
    %c0_18 = arith.constant 0 : index
    %37 = vector.load %arg7[%c0_17, %c0_18] : memref<4x1xf32, #tpu.memory_space<vmem>>, vector<4x1xf32>
    %38 = arith.mulf %31, %31 : vector<4x256xf32>
    %cst_19 = arith.constant dense<0.000000e+00> : vector<4xf32>
    %39 = vector.multi_reduction <add>, %38, %cst_19 [1] : vector<4x256xf32> to vector<4xf32>
    %40 = vector.shape_cast %39 : vector<4xf32> to vector<4x1xf32>
    %41 = arith.addf %37, %40 : vector<4x1xf32>
    %c0_20 = arith.constant 0 : index
    %c0_21 = arith.constant 0 : index
    %42 = vector.load %arg7[%c0_20, %c0_21] : memref<4x1xf32, #tpu.memory_space<vmem>>, vector<4x1xf32>
    tpu.vector_store %arg7[%c0_20, %c0_21], %41 {strides = array<i32>} : memref<4x1xf32, #tpu.memory_space<vmem>>, vector<4x1xf32>,
    %43 = vector.shape_cast %31 : vector<4x256xf32> to vector<1x4x256xf32>
    %c0_22 = arith.constant 0 : index
    %c0_23 = arith.constant 0 : index
    %c0_24 = arith.constant 0 : index
    %44 = vector.load %arg5[%c0_22, %c0_23, %c0_24] : memref<1x4x256xf32, #tpu.memory_space<vmem>>, vector<1x4x256xf32>
    tpu.vector_store %arg5[%c0_22, %c0_23, %c0_24], %43 {strides = array<i32>} : memref<1x4x256xf32, #tpu.memory_space<vmem>>, vector<1x4x256xf32>,
    return
  }
  func.func @transform_0(%arg0: i32) -> (i32, i32, i32) {
    %c0_i32 = arith.constant 0 : i32
    %c0_i32_0 = arith.constant 0 : i32
    %c0_i32_1 = arith.constant 0 : i32
    return %arg0, %c0_i32, %c0_i32_0 : i32, i32, i32
  }
  func.func @transform_1(%arg0: i32) -> (i32, i32) {
    %c0_i32 = arith.constant 0 : i32
    %c0_i32_0 = arith.constant 0 : i32
    %c0_i32_1 = arith.constant 0 : i32
    return %c0_i32, %c0_i32_0 : i32, i32
  }
  func.func @transform_2(%arg0: i32) -> (i32, i32) {
    %c0_i32 = arith.constant 0 : i32
    %c0_i32_0 = arith.constant 0 : i32
    %c0_i32_1 = arith.constant 0 : i32
    return %c0_i32, %c0_i32_0 : i32, i32
  }
  func.func @transform_3(%arg0: i32) -> (i32, i32) {
    %c0_i32 = arith.constant 0 : i32
    %c0_i32_0 = arith.constant 0 : i32
    %c0_i32_1 = arith.constant 0 : i32
    return %c0_i32, %c0_i32_0 : i32, i32
  }
  func.func @transform_4(%arg0: i32) -> (i32, i32, i32) {
    %c0_i32 = arith.constant 0 : i32
    %c0_i32_0 = arith.constant 0 : i32
    %c0_i32_1 = arith.constant 0 : i32
    return %arg0, %c0_i32, %c0_i32_0 : i32, i32, i32
  }
  func.func @transform_5(%arg0: i32) -> (i32, i32) {
    %c0_i32 = arith.constant 0 : i32
    %c0_i32_0 = arith.constant 0 : i32
    %c0_i32_1 = arith.constant 0 : i32
    return %c0_i32, %c0_i32_0 : i32, i32
  }
  func.func @transform_6(%arg0: i32) -> (i32, i32) {
    %c0_i32 = arith.constant 0 : i32
    %c0_i32_0 = arith.constant 0 : i32
    %c0_i32_1 = arith.constant 0 : i32
    return %c0_i32, %c0_i32_0 : i32, i32
  }
}

module attributes {stable_mosaic.version = 11 : i64} {
  func.func @_bn_relu_conv1x1_stats_kernel(%arg0: i32, %arg1: memref<1x4x256xf32, #tpu.memory_space<vmem>>, %arg2: memref<4x1xf32, #tpu.memory_space<vmem>>, %arg3: memref<4x1xf32, #tpu.memory_space<vmem>>, %arg4: memref<16x4xbf16, #tpu.memory_space<vmem>>, %arg5: memref<1x16x256xf32, #tpu.memory_space<vmem>>, %arg6: memref<16x1xf32, #tpu.memory_space<vmem>>, %arg7: memref<16x1xf32, #tpu.memory_space<vmem>>) attributes {dimension_semantics = [#tpu.dimension_semantics<arbitrary>], iteration_bounds = array<i64: 2>, scalar_prefetch = 0 : i64, scratch_operands = 0 : i64, tpu.core_type = #tpu.core_type<tc>, window_params = [{transform_indices = @transform_0, window_bounds = array<i64: 1, 4, 256>}, {pipeline_mode = #tpu.pipeline_mode<synchronous>, transform_indices = @transform_1, window_bounds = array<i64: 4, 1>}, {pipeline_mode = #tpu.pipeline_mode<synchronous>, transform_indices = @transform_2, window_bounds = array<i64: 4, 1>}, {pipeline_mode = #tpu.pipeline_mode<synchronous>, transform_indices = @transform_3, window_bounds = array<i64: 16, 4>}, {transform_indices = @transform_4, window_bounds = array<i64: 1, 16, 256>}, {pipeline_mode = #tpu.pipeline_mode<synchronous>, transform_indices = @transform_5, window_bounds = array<i64: 16, 1>}, {pipeline_mode = #tpu.pipeline_mode<synchronous>, transform_indices = @transform_6, window_bounds = array<i64: 16, 1>}]} {
    %c0_i32 = arith.constant 0 : i32
    %0 = arith.cmpi eq, %arg0, %c0_i32 : i32
    %1 = arith.extui %0 : i1 to i32
    %c0_i32_0 = arith.constant 0 : i32
    %2 = arith.cmpi ne, %1, %c0_i32_0 : i32
    scf.if %2 {
      %cst_23 = arith.constant 0.000000e+00 : f32
      %29 = vector.broadcast %cst_23 : f32 to vector<16x1xf32>
      %c0_24 = arith.constant 0 : index
      %c0_25 = arith.constant 0 : index
      %30 = vector.load %arg6[%c0_24, %c0_25] : memref<16x1xf32, #tpu.memory_space<vmem>>, vector<16x1xf32>
      tpu.vector_store %arg6[%c0_24, %c0_25], %29 {strides = array<i32>} : memref<16x1xf32, #tpu.memory_space<vmem>>, vector<16x1xf32>,
      %cst_26 = arith.constant 0.000000e+00 : f32
      %31 = vector.broadcast %cst_26 : f32 to vector<16x1xf32>
      %c0_27 = arith.constant 0 : index
      %c0_28 = arith.constant 0 : index
      %32 = vector.load %arg7[%c0_27, %c0_28] : memref<16x1xf32, #tpu.memory_space<vmem>>, vector<16x1xf32>
      tpu.vector_store %arg7[%c0_27, %c0_28], %31 {strides = array<i32>} : memref<16x1xf32, #tpu.memory_space<vmem>>, vector<16x1xf32>,
    } else {
    }
    %c0 = arith.constant 0 : index
    %c0_1 = arith.constant 0 : index
    %c0_2 = arith.constant 0 : index
    %3 = vector.load %arg1[%c0, %c0_1, %c0_2] : memref<1x4x256xf32, #tpu.memory_space<vmem>>, vector<1x4x256xf32>
    %4 = vector.shape_cast %3 : vector<1x4x256xf32> to vector<4x256xf32>
    %c0_3 = arith.constant 0 : index
    %c0_4 = arith.constant 0 : index
    %5 = vector.load %arg2[%c0_3, %c0_4] : memref<4x1xf32, #tpu.memory_space<vmem>>, vector<4x1xf32>
    %6 = vector.broadcast %5 : vector<4x1xf32> to vector<4x256xf32>
    %7 = arith.mulf %4, %6 : vector<4x256xf32>
    %c0_5 = arith.constant 0 : index
    %c0_6 = arith.constant 0 : index
    %8 = vector.load %arg3[%c0_5, %c0_6] : memref<4x1xf32, #tpu.memory_space<vmem>>, vector<4x1xf32>
    %9 = vector.broadcast %8 : vector<4x1xf32> to vector<4x256xf32>
    %10 = arith.addf %7, %9 : vector<4x256xf32>
    %cst = arith.constant 0.000000e+00 : f32
    %11 = vector.broadcast %cst : f32 to vector<4x256xf32>
    %12 = arith.maximumf %10, %11 : vector<4x256xf32>
    %c0_7 = arith.constant 0 : index
    %c0_8 = arith.constant 0 : index
    %13 = vector.load %arg4[%c0_7, %c0_8] : memref<16x4xbf16, #tpu.memory_space<vmem>>, vector<16x4xbf16>
    %14 = arith.truncf %12 : vector<4x256xf32> to vector<4x256xbf16>
    %cst_9 = arith.constant dense<0.000000e+00> : vector<16x256xf32>
    %15 = tpu.matmul %13, %14, %cst_9 {dimension_numbers = #tpu.dot_dimension_numbers<[1], [0], [0], [1], [0, 0, 1, 1], [], []>} : vector<16x4xbf16>, vector<4x256xbf16>, vector<16x256xf32> -> vector<16x256xf32>
    %c0_10 = arith.constant 0 : index
    %c0_11 = arith.constant 0 : index
    %16 = vector.load %arg6[%c0_10, %c0_11] : memref<16x1xf32, #tpu.memory_space<vmem>>, vector<16x1xf32>
    %cst_12 = arith.constant dense<0.000000e+00> : vector<16xf32>
    %17 = vector.multi_reduction <add>, %15, %cst_12 [1] : vector<16x256xf32> to vector<16xf32>
    %18 = vector.shape_cast %17 : vector<16xf32> to vector<16x1xf32>
    %19 = arith.addf %16, %18 : vector<16x1xf32>
    %c0_13 = arith.constant 0 : index
    %c0_14 = arith.constant 0 : index
    %20 = vector.load %arg6[%c0_13, %c0_14] : memref<16x1xf32, #tpu.memory_space<vmem>>, vector<16x1xf32>
    tpu.vector_store %arg6[%c0_13, %c0_14], %19 {strides = array<i32>} : memref<16x1xf32, #tpu.memory_space<vmem>>, vector<16x1xf32>,
    %c0_15 = arith.constant 0 : index
    %c0_16 = arith.constant 0 : index
    %21 = vector.load %arg7[%c0_15, %c0_16] : memref<16x1xf32, #tpu.memory_space<vmem>>, vector<16x1xf32>
    %22 = arith.mulf %15, %15 : vector<16x256xf32>
    %cst_17 = arith.constant dense<0.000000e+00> : vector<16xf32>
    %23 = vector.multi_reduction <add>, %22, %cst_17 [1] : vector<16x256xf32> to vector<16xf32>
    %24 = vector.shape_cast %23 : vector<16xf32> to vector<16x1xf32>
    %25 = arith.addf %21, %24 : vector<16x1xf32>
    %c0_18 = arith.constant 0 : index
    %c0_19 = arith.constant 0 : index
    %26 = vector.load %arg7[%c0_18, %c0_19] : memref<16x1xf32, #tpu.memory_space<vmem>>, vector<16x1xf32>
    tpu.vector_store %arg7[%c0_18, %c0_19], %25 {strides = array<i32>} : memref<16x1xf32, #tpu.memory_space<vmem>>, vector<16x1xf32>,
    %27 = vector.shape_cast %15 : vector<16x256xf32> to vector<1x16x256xf32>
    %c0_20 = arith.constant 0 : index
    %c0_21 = arith.constant 0 : index
    %c0_22 = arith.constant 0 : index
    %28 = vector.load %arg5[%c0_20, %c0_21, %c0_22] : memref<1x16x256xf32, #tpu.memory_space<vmem>>, vector<1x16x256xf32>
    tpu.vector_store %arg5[%c0_20, %c0_21, %c0_22], %27 {strides = array<i32>} : memref<1x16x256xf32, #tpu.memory_space<vmem>>, vector<1x16x256xf32>,
    return
  }
  func.func @transform_0(%arg0: i32) -> (i32, i32, i32) {
    %c0_i32 = arith.constant 0 : i32
    %c0_i32_0 = arith.constant 0 : i32
    %c0_i32_1 = arith.constant 0 : i32
    return %arg0, %c0_i32, %c0_i32_0 : i32, i32, i32
  }
  func.func @transform_1(%arg0: i32) -> (i32, i32) {
    %c0_i32 = arith.constant 0 : i32
    %c0_i32_0 = arith.constant 0 : i32
    %c0_i32_1 = arith.constant 0 : i32
    return %c0_i32, %c0_i32_0 : i32, i32
  }
  func.func @transform_2(%arg0: i32) -> (i32, i32) {
    %c0_i32 = arith.constant 0 : i32
    %c0_i32_0 = arith.constant 0 : i32
    %c0_i32_1 = arith.constant 0 : i32
    return %c0_i32, %c0_i32_0 : i32, i32
  }
  func.func @transform_3(%arg0: i32) -> (i32, i32) {
    %c0_i32 = arith.constant 0 : i32
    %c0_i32_0 = arith.constant 0 : i32
    %c0_i32_1 = arith.constant 0 : i32
    return %c0_i32, %c0_i32_0 : i32, i32
  }
  func.func @transform_4(%arg0: i32) -> (i32, i32, i32) {
    %c0_i32 = arith.constant 0 : i32
    %c0_i32_0 = arith.constant 0 : i32
    %c0_i32_1 = arith.constant 0 : i32
    return %arg0, %c0_i32, %c0_i32_0 : i32, i32, i32
  }
  func.func @transform_5(%arg0: i32) -> (i32, i32) {
    %c0_i32 = arith.constant 0 : i32
    %c0_i32_0 = arith.constant 0 : i32
    %c0_i32_1 = arith.constant 0 : i32
    return %c0_i32, %c0_i32_0 : i32, i32
  }
  func.func @transform_6(%arg0: i32) -> (i32, i32) {
    %c0_i32 = arith.constant 0 : i32
    %c0_i32_0 = arith.constant 0 : i32
    %c0_i32_1 = arith.constant 0 : i32
    return %c0_i32, %c0_i32_0 : i32, i32
  }
}

module attributes {stable_mosaic.version = 11 : i64} {
  func.func @_bn_residual_relu_kernel(%arg0: i32, %arg1: memref<1x16x256xf32, #tpu.memory_space<vmem>>, %arg2: memref<1x16x256xf32, #tpu.memory_space<vmem>>, %arg3: memref<16x1xf32, #tpu.memory_space<vmem>>, %arg4: memref<16x1xf32, #tpu.memory_space<vmem>>, %arg5: memref<1x16x256xf32, #tpu.memory_space<vmem>>) attributes {dimension_semantics = [#tpu.dimension_semantics<parallel>], iteration_bounds = array<i64: 2>, scalar_prefetch = 0 : i64, scratch_operands = 0 : i64, tpu.core_type = #tpu.core_type<tc>, window_params = [{transform_indices = @transform_0, window_bounds = array<i64: 1, 16, 256>}, {transform_indices = @transform_1, window_bounds = array<i64: 1, 16, 256>}, {pipeline_mode = #tpu.pipeline_mode<synchronous>, transform_indices = @transform_2, window_bounds = array<i64: 16, 1>}, {pipeline_mode = #tpu.pipeline_mode<synchronous>, transform_indices = @transform_3, window_bounds = array<i64: 16, 1>}, {transform_indices = @transform_4, window_bounds = array<i64: 1, 16, 256>}]} {
    %c0 = arith.constant 0 : index
    %c0_0 = arith.constant 0 : index
    %c0_1 = arith.constant 0 : index
    %0 = vector.load %arg1[%c0, %c0_0, %c0_1] : memref<1x16x256xf32, #tpu.memory_space<vmem>>, vector<1x16x256xf32>
    %c0_2 = arith.constant 0 : index
    %c0_3 = arith.constant 0 : index
    %1 = vector.load %arg3[%c0_2, %c0_3] : memref<16x1xf32, #tpu.memory_space<vmem>>, vector<16x1xf32>
    %2 = vector.shape_cast %1 : vector<16x1xf32> to vector<1x16x1xf32>
    %3 = vector.broadcast %2 : vector<1x16x1xf32> to vector<1x16x256xf32>
    %4 = arith.mulf %0, %3 : vector<1x16x256xf32>
    %c0_4 = arith.constant 0 : index
    %c0_5 = arith.constant 0 : index
    %5 = vector.load %arg4[%c0_4, %c0_5] : memref<16x1xf32, #tpu.memory_space<vmem>>, vector<16x1xf32>
    %6 = vector.shape_cast %5 : vector<16x1xf32> to vector<1x16x1xf32>
    %7 = vector.broadcast %6 : vector<1x16x1xf32> to vector<1x16x256xf32>
    %8 = arith.addf %4, %7 : vector<1x16x256xf32>
    %c0_6 = arith.constant 0 : index
    %c0_7 = arith.constant 0 : index
    %c0_8 = arith.constant 0 : index
    %9 = vector.load %arg2[%c0_6, %c0_7, %c0_8] : memref<1x16x256xf32, #tpu.memory_space<vmem>>, vector<1x16x256xf32>
    %10 = arith.addf %8, %9 : vector<1x16x256xf32>
    %cst = arith.constant 0.000000e+00 : f32
    %11 = vector.broadcast %cst : f32 to vector<1x16x256xf32>
    %12 = arith.maximumf %10, %11 : vector<1x16x256xf32>
    %c0_9 = arith.constant 0 : index
    %c0_10 = arith.constant 0 : index
    %c0_11 = arith.constant 0 : index
    %13 = vector.load %arg5[%c0_9, %c0_10, %c0_11] : memref<1x16x256xf32, #tpu.memory_space<vmem>>, vector<1x16x256xf32>
    tpu.vector_store %arg5[%c0_9, %c0_10, %c0_11], %12 {strides = array<i32>} : memref<1x16x256xf32, #tpu.memory_space<vmem>>, vector<1x16x256xf32>,
    return
  }
  func.func @transform_0(%arg0: i32) -> (i32, i32, i32) {
    %c0_i32 = arith.constant 0 : i32
    %c0_i32_0 = arith.constant 0 : i32
    %c0_i32_1 = arith.constant 0 : i32
    return %arg0, %c0_i32, %c0_i32_0 : i32, i32, i32
  }
  func.func @transform_1(%arg0: i32) -> (i32, i32, i32) {
    %c0_i32 = arith.constant 0 : i32
    %c0_i32_0 = arith.constant 0 : i32
    %c0_i32_1 = arith.constant 0 : i32
    return %arg0, %c0_i32, %c0_i32_0 : i32, i32, i32
  }
  func.func @transform_2(%arg0: i32) -> (i32, i32) {
    %c0_i32 = arith.constant 0 : i32
    %c0_i32_0 = arith.constant 0 : i32
    %c0_i32_1 = arith.constant 0 : i32
    return %c0_i32, %c0_i32_0 : i32, i32
  }
  func.func @transform_3(%arg0: i32) -> (i32, i32) {
    %c0_i32 = arith.constant 0 : i32
    %c0_i32_0 = arith.constant 0 : i32
    %c0_i32_1 = arith.constant 0 : i32
    return %c0_i32, %c0_i32_0 : i32, i32
  }
  func.func @transform_4(%arg0: i32) -> (i32, i32, i32) {
    %c0_i32 = arith.constant 0 : i32
    %c0_i32_0 = arith.constant 0 : i32
    %c0_i32_1 = arith.constant 0 : i32
    return %arg0, %c0_i32, %c0_i32_0 : i32, i32, i32
  }
}

</mosaic_0001>

<bundles_post_ra>
// kernel: bottleneck_forward.4
= control target key start
LH: loop header
LB: loop body
LE: loop exit
PB: predicated region body
PF: predicated region fallthrough
CT: control target
= control target key end

     0   :  { %s405_s15 = smov 0   ;;  %s446_s0 = inlined_call_operand.vmem [shape: f32[2,16,256], index: 0, kind: input, shape index: {}]   ;;  %s447_s1 = inlined_call_operand.vmem [shape: bf16[4,16], index: 1, kind: input, shape index: {}]   ;;  %s448_s2 = inlined_call_operand.vmem [shape: f32[2,4,256], index: 2, kind: output, shape index: {0}]   ;;  %s449_s3 = inlined_call_operand.vmem [shape: f32[4,1], index: 3, kind: output, shape index: {1}]   ;;  %s450_s4 = inlined_call_operand.vmem [shape: f32[4,1], index: 4, kind: output, shape index: {2}]  }
   0x1 LB: > { %s345_s16 = sadd.s32 4294967295, %s376_s15   ;;  %p349_p0 = scmp.ge.s32.totalorder %s376_s15, 1  ;;  %s376_s15 = sphi %s405_s15, %s15_s15  }
   0x2   : > { %p157_p1 = scmp.lt.s32.totalorder %s376_s15, 3 }
   0x4   : > { %p158_p2 = pnand %p349_p0, %p157_p1 }
   0x5   : > { %p183_p3 = scmp.lt.s32.totalorder (!%p158_p2), %s345_s16, 1  ;;  %p354_p4 = scmp.ne.s32.totalorder (!%p158_p2), %s345_s16, 0 }
   0x6   : > { %161 = sbr.rel (%p158_p2) target bundleno = 393 (0x189), region = 28 }
   0xd   : > { %s184_s17 = scalar_select %p183_p3, %s345_s16, 1 }
   0xe   : > { %197 = sbr.rel (%p354_p4) target bundleno = 21 (0x15), region = 32  ;;  %vm198_vm0 = vcmask (!%p354_p4), 3072   ;;  %v378_v0 = vmov (!%p354_p4), 0.0  }
   0xf   : > { %s358_s18 = sshll.u32 %s184_s17, 5  ;;  %s359_s19 = sshll.u32 %s184_s17, 3  ;;  %199 = vst.msk [vmem:[%s449_s3] sm:$0xf] (!%p354_p4), %vm198_vm0, %v378_v0  ;;  %200 = vst.msk [vmem:[%s450_s4] sm:$0xf] (!%p354_p4), %vm198_vm0, %v378_v0 }
  0x10   : > { %s187_s22 = scalar_lea.vmem %s446_s0, %s358_s18  ;;  %s419_s25 = scalar_lea.vmem %s448_s2, %s359_s19 }
  0x15 PF: > { %v202_v1 = vld [vmem:[%s187_s22 + $0x8] sm:$0xff]  ;;  %v204_v2 = vld [vmem:[%s187_s22 + $0x18] sm:$0xff]  ;;  %v201_v3 = vld [vmem:[%s187_s22] sm:$0xff]  ;;  %v379_v6 = vmov 0   ;;  %vm208_vm1 = vcmask 130048   ;;  %vm254_vm2 = vcmask 1043456  }
  0x16   : > { %v206_v4 = vpack.c.bf16 %v204_v2, %v202_v1  ;;  %v203_v5 = vld [vmem:[%s187_s22 + $0x10] sm:$0xff]  ;;  %244 = vmatprep.mubr.bf16.mxu0 %v379_v6  ;;  %v207_v8 = vld [vmem:[%s447_s1] sm:$0x3]  ;;  %vm261_vm3 = vcmask 3072  }
  0x17   : > { %v205_v7 = vpack.c.bf16 %v203_v5, %v201_v3  ;;  %v253_v22 = vld [vmem:[%s449_s3] sm:$0xf] }
  0x18   : > { %212 = vmatprep.subr.bf16.mxu0 %v206_v4  ;;  %v263_v25 = vld [vmem:[%s450_s4] sm:$0xf] }
  0x19   : > { %213 = vmatpush1.bf16.msra.mxu0 %v205_v7 }
  0x1c   : > { %355 = vmatmul.mubr.msk.bf16.vlgmr.msra.gmra.mrb[0].mxu0 %vm208_vm1, %v207_v8 }
  0xef   : > { %v246_v9 = vpop.f32.mrb[0].mxu0 }
  0xf0   : > { %v264_v10 = vmul.f32 %v246_v9, %v246_v9  ;;  %v248_v11 = vpop.f32.mrb[1].mxu0  ;;  %v255_v12 = vsel %vm254_vm2, %v246_v9, 0.0 }
  0xf1   : > { %v265_v13 = vmul.f32 %v248_v11, %v248_v11  ;;  %v275_v14 = vcombine.low %v246_v9, %v248_v11  ;;  %v250_v15 = vpop.f32.mrb[2].mxu0  ;;  %v256_v16 = vsel %vm254_vm2, %v248_v11, 0.0 }
  0xf2   : > { %v251_v17 = vpop.f32.mrb[3].mxu0  ;;  %v257_v18 = vadd.f32 %v256_v16, %v255_v12  ;;  %v266_v19 = vsel %vm254_vm2, %v264_v10, 0.0 }
  0xf3   : > { %277 = vst [vmem:[%s419_s25] sm:$0xff] %v275_v14  ;;  %v267_v20 = vsel %vm254_vm2, %v265_v13, 0.0 }
  0xf4   : > { %258 = vadd.xlane.f32.xlu0 %v257_v18  ;;  %v268_v21 = vadd.f32 %v267_v20, %v266_v19 }
  0xf8   : > { %269 = vadd.xlane.f32.xlu0 %v268_v21 }
 0x181   : > { %v259_v23 = vpop.xlane.xlu0 %258 }
 0x182   : > { %v260_v24 = vadd.f32 %v259_v23, %v253_v22 }
 0x184   : > { %262 = vst.msk [vmem:[%s449_s3] sm:$0xf] %vm261_vm3, %v260_v24 }
 0x185   : > { %v270_v26 = vpop.xlane.xlu0 %269 }
 0x186   : > { %v271_v27 = vadd.f32 %v270_v26, %v263_v25 }
 0x188   : > { %272 = vst.msk [vmem:[%s450_s4] sm:$0xf] %vm261_vm3, %v271_v27 }
 0x189 PF: > { %s15_s15 = sadd.s32 1, %s376_s15  }
 0x18a   : > { %p12_p5 = scmp.ge.s32.totalorder %s15_s15, 4  }
 0x18c   :  { %14 = sbr.rel (!%p12_p5) target bundleno = 1 (0x1), region = 78 }

// kernel: bottleneck_forward.7
= control target key start
LH: loop header
LB: loop body
LE: loop exit
PB: predicated region body
PF: predicated region fallthrough
CT: control target
= control target key end

     0   :  { %s398_s15 = smov 0   ;;  %s430_s0 = inlined_call_operand.vmem [shape: f32[2,16,256], index: 0, kind: input, shape index: {}]   ;;  %s431_s1 = inlined_call_operand.vmem [shape: f32[2,16,256], index: 1, kind: input, shape index: {}]   ;;  %s432_s2 = inlined_call_operand.vmem [shape: f32[16,1], index: 2, kind: input, shape index: {}]   ;;  %s433_s3 = inlined_call_operand.vmem [shape: f32[16,1], index: 3, kind: input, shape index: {}]   ;;  %s434_s4 = inlined_call_operand.vmem [shape: f32[2,16,256], index: 4, kind: output, shape index: {}]  }
   0x1 LB: > { %s337_s16 = sadd.s32 4294967295, %s370_s15   ;;  %p341_p0 = scmp.ge.s32.totalorder %s370_s15, 1  ;;  %s370_s15 = sphi %s398_s15, %s14_s15  }
   0x2   : > { %p172_p1 = scmp.lt.s32.totalorder %s370_s15, 3 }
   0x4   : > { %p173_p2 = pnand %p341_p0, %p172_p1 }
   0x5   : > { %v238_v0 = vld [vmem:[%s433_s3] sm:$0xff] (!%p173_p2)  ;;  %v372_v2 = vmov (!%p173_p2), 0   ;;  %v239_v3 = vld [vmem:[%s433_s3 + $0x8] sm:$0xff] (!%p173_p2)  ;;  %p203_p3 = scmp.lt.s32.totalorder (!%p173_p2), %s337_s16, 1 }
   0x6   : > { %176 = sbr.rel (%p173_p2) target bundleno = 148 (0x94), region = 36  ;;  %v222_v1 = vld [vmem:[%s432_s2] sm:$0xff] (!%p173_p2)  ;;  %363 = vset.pattern.permute.xlu1 (!%p173_p2), %v372_v2  ;;  %362 = vset.pattern.permute.xlu0 (!%p173_p2), %v372_v2  ;;  %v223_v4 = vld [vmem:[%s432_s2 + $0x8] sm:$0xff] (!%p173_p2) }
   0x7   : > { %242 = vperm.xlu1 (!%p173_p2), %363, %v238_v0   ;;  %226 = vperm.xlu0 (!%p173_p2), %362, %v222_v1  }
   0xb   : > { %247 = vperm.xlu1 (!%p173_p2), %363, %v239_v3   ;;  %231 = vperm.xlu0 (!%p173_p2), %362, %v223_v4  }
   0xd   : > { %s436_s16 = smov (!%p203_p3, %s337_s16), 1 }
   0xe   : > { %s350_s25 = sshll.u32 %s436_s16, 5 }
   0xf   : > { %s207_s28 = scalar_lea.vmem %s430_s0, %s350_s25  ;;  %s212_s5 = scalar_lea.vmem %s431_s1, %s350_s25 }
  0x10   : > { %v218_v5 = vld [vmem:[%s207_s28] sm:$0xff]  ;;  %v219_v6 = vld [vmem:[%s207_s28 + $0x8] sm:$0xff]  ;;  %v220_v13 = vld [vmem:[%s207_s28 + $0x10] sm:$0xff]  ;;  %s217_s8 = scalar_lea.vmem %s434_s4, %s350_s25 }
  0x11   : > { %v254_v11 = vld [vmem:[%s212_s5] sm:$0xff]  ;;  %v255_v12 = vld [vmem:[%s212_s5 + $0x8] sm:$0xff]  ;;  %v221_v14 = vld [vmem:[%s207_s28 + $0x18] sm:$0xff] }
  0x12   : > { %v256_v23 = vld [vmem:[%s212_s5 + $0x10] sm:$0xff]  ;;  %v257_v24 = vld [vmem:[%s212_s5 + $0x18] sm:$0xff] }
  0x86   : > { %v243_v7 = vpop.permute.xlu1 %242  ;;  %v227_v8 = vpop.permute.xlu0 %226 }
  0x87   : > { %v234_v9 = vmul.f32 %v227_v8, %v218_v5  ;;  %v235_v10 = vmul.f32 %v227_v8, %v219_v6 }
  0x89   : > { %v250_v15 = vadd.f32 %v243_v7, %v234_v9  ;;  %v251_v16 = vadd.f32 %v243_v7, %v235_v10 }
  0x8a   : > { %v232_v17 = vpop.permute.xlu0 %231  ;;  %v248_v22 = vpop.permute.xlu1 %247 }
  0x8b   : > { %v258_v18 = vadd.f32 %v254_v11, %v250_v15  ;;  %v259_v19 = vadd.f32 %v255_v12, %v251_v16  ;;  %v236_v20 = vmul.f32 %v232_v17, %v220_v13  ;;  %v237_v21 = vmul.f32 %v232_v17, %v221_v14 }
  0x8d   : > { %v262_v25 = vmax.f32 %v258_v18, 0.0  ;;  %v263_v26 = vmax.f32 %v259_v19, 0.0  ;;  %v252_v27 = vadd.f32 %v248_v22, %v236_v20  ;;  %v253_v28 = vadd.f32 %v248_v22, %v237_v21 }
  0x8f   : > { %266 = vst [vmem:[%s217_s8] sm:$0xff] %v262_v25  ;;  %267 = vst [vmem:[%s217_s8 + $0x8] sm:$0xff] %v263_v26  ;;  %v260_v29 = vadd.f32 %v256_v23, %v252_v27  ;;  %v261_v30 = vadd.f32 %v257_v24, %v253_v28 }
  0x91   : > { %v264_v31 = vmax.f32 %v260_v29, 0.0  ;;  %v265_v32 = vmax.f32 %v261_v30, 0.0 }
  0x93   : > { %268 = vst [vmem:[%s217_s8 + $0x10] sm:$0xff] %v264_v31  ;;  %269 = vst [vmem:[%s217_s8 + $0x18] sm:$0xff] %v265_v32 }
  0x94 PF: > { %s14_s15 = sadd.s32 1, %s370_s15  }
  0x95   : > { %p11_p4 = scmp.ge.s32.totalorder %s14_s15, 4  }
  0x97   :  { %13 = sbr.rel (!%p11_p4) target bundleno = 1 (0x1), region = 69 }

// kernel: bottleneck_forward.6
= control target key start
LH: loop header
LB: loop body
LE: loop exit
PB: predicated region body
PF: predicated region fallthrough
CT: control target
= control target key end

     0   :  { %s529_s21 = smov 0   ;;  %s597_s0 = inlined_call_operand.vmem [shape: f32[2,4,256], index: 0, kind: input, shape index: {}]   ;;  %s598_s1 = inlined_call_operand.vmem [shape: f32[4,1], index: 1, kind: input, shape index: {}]   ;;  %s599_s2 = inlined_call_operand.vmem [shape: f32[4,1], index: 2, kind: input, shape index: {}]   ;;  %s600_s3 = inlined_call_operand.vmem [shape: bf16[16,4], index: 3, kind: input, shape index: {}]   ;;  %s601_s4 = inlined_call_operand.vmem [shape: f32[2,16,256], index: 4, kind: output, shape index: {0}]   ;;  %s602_s5 = inlined_call_operand.vmem [shape: f32[16,1], index: 5, kind: output, shape index: {1}]   ;;  %s603_s6 = inlined_call_operand.vmem [shape: f32[16,1], index: 6, kind: output, shape index: {2}]  }
   0x1 LB: > { %s453_s22 = sadd.s32 4294967295, %s489_s21   ;;  %p457_p0 = scmp.ge.s32.totalorder %s489_s21, 1  ;;  %s489_s21 = sphi %s529_s21, %s17_s21  }
   0x2   : > { %p207_p1 = scmp.lt.s32.totalorder %s489_s21, 3 }
   0x4   : > { %p208_p2 = pnand %p457_p0, %p207_p1 }
   0x5   : > { %p237_p3 = scmp.lt.s32.totalorder (!%p208_p2), %s453_s22, 1  ;;  %p462_p4 = scmp.ne.s32.totalorder (!%p208_p2), %s453_s22, 0 }
   0x6   : > { %211 = sbr.rel (%p208_p2) target bundleno = 537 (0x219), region = 36 }
   0xd   : > { %s238_s23 = scalar_select %p237_p3, %s453_s22, 1 }
   0xe   : > { %251 = sbr.rel (%p462_p4) target bundleno = 21 (0x15), region = 40  ;;  %vm252_vm0 = vcmask (!%p462_p4), 7168   ;;  %v491_v0 = vmov (!%p462_p4), 0.0  }
   0xf   : > { %s468_s24 = sshll.u32 %s238_s23, 3  ;;  %s469_s25 = sshll.u32 %s238_s23, 5  ;;  %253 = vst.msk [vmem:[%s602_s5] sm:$0xff] (!%p462_p4), %vm252_vm0, %v491_v0  ;;  %254 = vst.msk [vmem:[%s602_s5 + $0x8] sm:$0xff] (!%p462_p4), %vm252_vm0, %v491_v0 }
  0x10   : > { %s241_s28 = scalar_lea.vmem %s597_s0, %s468_s24  ;;  %s543_s7 = scalar_lea.vmem %s601_s4, %s469_s25  ;;  %255 = vst.msk [vmem:[%s603_s6] sm:$0xff] (!%p462_p4), %vm252_vm0, %v491_v0  ;;  %256 = vst.msk [vmem:[%s603_s6 + $0x8] sm:$0xff] (!%p462_p4), %vm252_vm0, %v491_v0 }
  0x15 PF: > { %v258_v1 = vld [vmem:[%s598_s1] sm:$0xf]  ;;  %v492_v2 = vmov 0   ;;  %v493_v4 = vmov 839922192   ;;  %v266_v6 = vlaneseq  ;;  %vm303_vm1 = vcmask 1041408  }
  0x16   : > { %481 = vset.pattern.permute.xlu0 %v492_v2  ;;  %342 = vmatprep.mubr.bf16.mxu0 %v492_v2  ;;  %v272_v3 = vld [vmem:[%s599_s2] sm:$0xf]  ;;  %v264_v5 = vunpack.c.l.s4 %v493_v4  ;;  %vm299_vm2 = vcmask 31744   ;;  %vm363_vm3 = vcmask 7168   ;;  %v354_v40 = vld [vmem:[%s602_s5 + $0x8] sm:$0xff] }
  0x17   : > { %261 = vperm.xlu0 %481, %v258_v1   ;;  %v267_v8 = vshrl.u32 %v266_v6, 7  ;;  %v257_v12 = vld [vmem:[%s241_s28] sm:$0xff]  ;;  %v367_v44 = vld [vmem:[%s603_s6 + $0x8] sm:$0xff] }
  0x18   : > { %v265_v7 = vunpack.c.0.s8 %v264_v5  ;;  %v482_v22 = vld [vmem:[%s600_s3] sm:$0xff]  }
  0x19   : > { %v353_v35 = vld [vmem:[%s602_s5] sm:$0xff] }
  0x1a   : > { %v268_v9 = vsub.s32 %v265_v7, %v267_v8  ;;  %v366_v37 = vld [vmem:[%s603_s6] sm:$0xff] }
  0x1b   : > { %275 = vperm.xlu0 %481, %v272_v3  }
  0x96   : > { %v262_v10 = vpop.permute.xlu0 %261 }
  0x97   : > { %v269_v11 = vrot.slane %v262_v10, %v268_v9 }
  0x99   : > { %v271_v14 = vmul.f32 %v269_v11, %v257_v12 }
  0x9a   : > { %v276_v13 = vpop.permute.xlu0 %275 }
  0x9b   : > { %v283_v15 = vrot.slane %v276_v13, %v268_v9 }
  0x9d   : > { %v285_v16 = vadd.f32 %v283_v15, %v271_v14 }
  0x9f   : > { %v286_v17 = vmax.f32 %v285_v16, 0.0 }
  0xa1   : > { %v290_v18 = vcombine.high %v286_v17, %v286_v17  ;;  %v292_v19 = vpack.c.bf16 %v286_v17, %v286_v17 }
  0xa3   : > { %v293_v20 = vpack.c.bf16 %v290_v18, %v290_v18  ;;  %v305_v21 = vsel %vm303_vm1, %v292_v19, 0 }
  0xa5   : > { %464 = vmatprep.subr.msk.bf16.mxu0 %vm303_vm1, %v293_v20 }
  0xa6   : > { %311 = vmatpush1.bf16.msra.mxu0 %v305_v21 }
  0xa9   : > { %465 = vmatmul.mubr.msk.bf16.vlgmr.msra.gmra.mrb[0].mxu0 %vm299_vm2, %v482_v22 }
 0x17c   : > { %v344_v23 = vpop.f32.mrb[0].mxu0 }
 0x17d   : > { %382 = vst [vmem:[%s543_s7] sm:$0xff] %v344_v23  ;;  %v346_v24 = vpop.f32.mrb[1].mxu0  ;;  %v368_v25 = vmul.f32 %v344_v23, %v344_v23 }
 0x17e   : > { %383 = vst [vmem:[%s543_s7 + $0x8] sm:$0xff] %v346_v24  ;;  %v348_v26 = vpop.f32.mrb[2].mxu0  ;;  %v355_v27 = vadd.f32 %v346_v24, %v344_v23  ;;  %v369_v28 = vmul.f32 %v346_v24, %v346_v24 }
 0x17f   : > { %384 = vst [vmem:[%s543_s7 + $0x10] sm:$0xff] %v348_v26  ;;  %v350_v29 = vpop.f32.mrb[3].mxu0  ;;  %v370_v30 = vmul.f32 %v348_v26, %v348_v26 }
 0x180   : > { %v371_v31 = vmul.f32 %v350_v29, %v350_v29  ;;  %385 = vst [vmem:[%s543_s7 + $0x18] sm:$0xff] %v350_v29  ;;  %356 = vadd.xlane.f32.xlu1 %v355_v27  ;;  %v372_v32 = vadd.f32 %v369_v28, %v368_v25  ;;  %v358_v33 = vadd.f32 %v350_v29, %v348_v26 }
 0x182   : > { %373 = vadd.xlane.f32.xlu0 %v372_v32  ;;  %v375_v34 = vadd.f32 %v371_v31, %v370_v30 }
 0x184   : > { %359 = vadd.xlane.f32.xlu1 %v358_v33 }
 0x188   : > { %376 = vadd.xlane.f32.xlu1 %v375_v34 }
 0x20d   : > { %v357_v36 = vpop.xlane.xlu1 %356 }
 0x20e   : > { %v361_v38 = vadd.f32 %v357_v36, %v353_v35 }
 0x20f   : > { %v374_v39 = vpop.xlane.xlu0 %373 }
 0x210   : > { %364 = vst.msk [vmem:[%s602_s5] sm:$0xff] %vm363_vm3, %v361_v38  ;;  %v378_v41 = vadd.f32 %v374_v39, %v366_v37 }
 0x211   : > { %v360_v42 = vpop.xlane.xlu1 %359 }
 0x212   : > { %380 = vst.msk [vmem:[%s603_s6] sm:$0xff] %vm363_vm3, %v378_v41  ;;  %v362_v43 = vadd.f32 %v360_v42, %v354_v40 }
 0x214   : > { %365 = vst.msk [vmem:[%s602_s5 + $0x8] sm:$0xff] %vm363_vm3, %v362_v43 }
 0x215   : > { %v377_v45 = vpop.xlane.xlu1 %376 }
 0x216   : > { %v379_v46 = vadd.f32 %v377_v45, %v367_v44 }
 0x218   : > { %381 = vst.msk [vmem:[%s603_s6 + $0x8] sm:$0xff] %vm363_vm3, %v379_v46 }
 0x219 PF: > { %s17_s21 = sadd.s32 1, %s489_s21  }
 0x21a   : > { %p14_p5 = scmp.ge.s32.totalorder %s17_s21, 4  }
 0x21c   :  { %16 = sbr.rel (!%p14_p5) target bundleno = 1 (0x1), region = 86 }

// kernel: bottleneck_forward.5
= control target key start
LH: loop header
LB: loop body
LE: loop exit
PB: predicated region body
PF: predicated region fallthrough
CT: control target
= control target key end

     0   :  { %s1939_s21 = smov 0   ;;  %s2660_s0 = inlined_call_operand.vmem [shape: f32[2,4,256], index: 0, kind: input, shape index: {}]   ;;  %s2661_s1 = inlined_call_operand.vmem [shape: f32[4,1], index: 1, kind: input, shape index: {}]   ;;  %s2662_s2 = inlined_call_operand.vmem [shape: f32[4,1], index: 2, kind: input, shape index: {}]   ;;  %s2663_s3 = inlined_call_operand.vmem [shape: bf16[4,36], index: 3, kind: input, shape index: {}]   ;;  %s2664_s4 = inlined_call_operand.vmem [shape: f32[2,4,256], index: 4, kind: output, shape index: {0}]   ;;  %s2665_s5 = inlined_call_operand.vmem [shape: f32[4,1], index: 5, kind: output, shape index: {1}]   ;;  %s2666_s6 = inlined_call_operand.vmem [shape: f32[4,1], index: 6, kind: output, shape index: {2}]  }
   0x1 LB: > { %s1841_s22 = sadd.s32 4294967295, %s1887_s21   ;;  %p1845_p0 = scmp.ge.s32.totalorder %s1887_s21, 1  ;;  %s1887_s21 = sphi %s1939_s21, %s17_s21  }
   0x2   : > { %p207_p1 = scmp.lt.s32.totalorder %s1887_s21, 3 }
   0x4   : > { %p208_p2 = pnand %p1845_p0, %p207_p1 }
   0x5   : > { %p237_p3 = scmp.lt.s32.totalorder (!%p208_p2), %s1841_s22, 1  ;;  %p1850_p4 = scmp.ne.s32.totalorder (!%p208_p2), %s1841_s22, 0 }
   0x6   : > { %211 = sbr.rel (%p208_p2) target bundleno = 1160 (0x488), region = 36 }
   0xd   : > { %s238_s23 = scalar_select %p237_p3, %s1841_s22, 1 }
   0xe   : > { %251 = sbr.rel (%p1850_p4) target bundleno = 21 (0x15), region = 40  ;;  %vm252_vm0 = vcmask (!%p1850_p4), 3072   ;;  %v1889_v0 = vmov (!%p1850_p4), 0.0  }
   0xf   : > { %s1855_s24 = sshll.u32 %s238_s23, 3  ;;  %253 = vst.msk [vmem:[%s2665_s5] sm:$0xf] (!%p1850_p4), %vm252_vm0, %v1889_v0  ;;  %254 = vst.msk [vmem:[%s2666_s6] sm:$0xf] (!%p1850_p4), %vm252_vm0, %v1889_v0 }
  0x10   : > { %s241_s27 = scalar_lea.vmem %s2660_s0, %s1855_s24  ;;  %s1953_s30 = scalar_lea.vmem %s2664_s4, %s1855_s24 }
  0x15 PF: > { %v256_v1 = vld [vmem:[%s2661_s1] sm:$0xf]  ;;  %v1890_v2 = vmov 0   ;;  %v1891_v4 = vmov 839922192   ;;  %v264_v6 = vlaneseq  ;;  %s1892_s15 = smov 80  }
  0x16   : > { %1880 = vset.pattern.permute.xlu0 %v1890_v2  ;;  %1740 = vmatprep.mubr.bf16.mxu0 %v1890_v2  ;;  %v270_v3 = vld [vmem:[%s2662_s2] sm:$0xf]  ;;  %v262_v5 = vunpack.c.l.s4 %v1891_v4  ;;  %s1893_s16 = smov 112   ;;  %s1894_s17 = smov 48   ;;  %v1899_v29 = vmov 1983009808  }
  0x17   : > { %259 = vperm.xlu0 %1880, %v256_v1   ;;  %v1969_v8 = vshrl.u32 %v264_v6, 7  ;;  %v255_v12 = vld [vmem:[%s241_s27] sm:$0xff]  ;;  %s1895_s18 = smov 96   ;;  %s1896_s19 = smov 16   ;;  %v336_v30 = vunpack.c.l.s4 %v1899_v29  ;;  %v1900_v34 = vmov 1934713408  }
  0x18   : > { %v263_v7 = vunpack.c.0.s8 %v262_v5  ;;  %s1897_s20 = smov 64   ;;  %s1898_s22 = smov 32   ;;  %v368_v35 = vunpack.c.l.s4 %v1900_v34  ;;  %vm482_vm1 = vcmask 1040384   ;;  %vm483_vm2 = vsmask.f32 256 }
  0x19   : > { %v337_v33 = vunpack.c.0.s8 %v336_v30  ;;  %vm2004_vm3 = vmand %vm482_vm1, %vm483_vm2  ;;  %s1901_s23 = smov 1   ;;  %vm517_vm4 = vcmask 7168   ;;  %vm535_vm5 = vcmask 138240   ;;  %vm625_vm6 = vcmask 1046528   ;;  %s1902_s24 = smov 127  }
  0x1a   : > { %v266_v9 = vsub.s32 %v263_v7, %v1969_v8  ;;  %v369_v45 = vunpack.c.0.s8 %v368_v35  ;;  %vm564_vm7 = vsmask.f32 7424  ;;  %s1903_s25 = smov 126   ;;  %vm1597_vm8 = vcmask 130048  }
  0x1b   : > { %273 = vperm.xlu0 %1880, %v270_v3   ;;  %v1987_v40 = vsub.s32 %v337_v33, %v1969_v8  ;;  %vm1607_vm9 = vcmask 261120   ;;  %vm1614_vm10 = vcmask 392192   ;;  %vm1621_vm11 = vcmask 523264  }
  0x1c   : > { %v1995_v54 = vsub.s32 %v369_v45, %v1969_v8  ;;  %vm1628_vm12 = vcmask 654336   ;;  %vm1635_vm13 = vcmask 785408   ;;  %vm1642_vm14 = vcmask 916480  }
  0x1d   : > { %vm1703_vm15 = vcmask 1041408   ;;  %vm1699_vm0 = vcmask 293888   ;;  %vm1750_vm1 = vcmask 1043456   ;;  %vm1757_vm2 = vcmask 3072  }
  0x96   : > { %v260_v10 = vpop.permute.xlu0 %259 }
  0x97   : > { %v267_v11 = vrot.slane %v260_v10, %v266_v9 }
  0x99   : > { %v269_v14 = vmul.f32 %v267_v11, %v255_v12 }
  0x9a   : > { %v274_v13 = vpop.permute.xlu0 %273 }
  0x9b   : > { %v281_v15 = vrot.slane %v274_v13, %v266_v9 }
  0x9d   : > { %v283_v16 = vadd.f32 %v281_v15, %v269_v14 }
  0x9f   : > { %v284_v17 = vmax.f32 %v283_v16, 0.0 }
  0xa1   : > { %v288_v18 = vpack.c.bf16 %v284_v17, %v284_v17  ;;  %v286_v19 = vcombine.high %v284_v17, %v284_v17 }
  0xa3   : > { %297 = vrot.lane.b32.xlu0 %v288_v18, %s1892_s15  ;;  %291 = vrot.lane.b32.xlu1 %v288_v18, %s1893_s16  ;;  %v289_v20 = vpack.c.bf16 %v286_v19, %v286_v19 }
  0xa7   : > { %303 = vrot.lane.b32.xlu0 %v288_v18, %s1894_s17  ;;  %294 = vrot.lane.b32.xlu1 %v288_v18, %s1895_s18 }
  0xab   : > { %309 = vrot.lane.b32.xlu0 %v288_v18, %s1896_s19  ;;  %300 = vrot.lane.b32.xlu1 %v288_v18, %s1897_s20 }
  0xaf   : > { %306 = vrot.lane.b32.xlu1 %v288_v18, %s1898_s22  ;;  %316 = vrot.lane.b32.xlu0 %v289_v20, %s1895_s18 }
  0xb3   : > { %322 = vrot.lane.b32.xlu0 %v289_v20, %s1897_s20  ;;  %313 = vrot.lane.b32.xlu1 %v289_v20, %s1893_s16 }
  0xb7   : > { %328 = vrot.lane.b32.xlu0 %v289_v20, %s1898_s22  ;;  %319 = vrot.lane.b32.xlu1 %v289_v20, %s1892_s15 }
  0xbb   : > { %325 = vrot.lane.b32.xlu1 %v289_v20, %s1894_s17 }
  0xbf   : > { %331 = vrot.lane.b32.xlu1 %v289_v20, %s1896_s19 }
 0x115   : > { %v298_v21 = vpop.permute.xlu0 %297  ;;  %v292_v22 = vpop.permute.xlu1 %291 }
 0x119   : > { %v304_v23 = vpop.permute.xlu0 %303  ;;  %v295_v24 = vpop.permute.xlu1 %294 }
 0x11a   : > { %v384_v49 = vcombine.low %v292_v22, %v304_v23 }
 0x11c   : > { %v391_v57 = vrot.slane %v384_v49, %v1987_v40 }
 0x11d   : > { %v310_v25 = vpop.permute.xlu0 %309  ;;  %v301_v26 = vpop.permute.xlu1 %300 }
 0x11e   : > { %v334_v42 = vcombine.low %v288_v18, %v301_v26  ;;  %v392_v43 = vcombine.low %v298_v21, %v310_v25 }
 0x120   : > { %v341_v50 = vrot.slane %v334_v42, %v1987_v40  ;;  %v399_v52 = vrot.slane %v392_v43, %v1987_v40 }
 0x121   : > { %v307_v27 = vpop.permute.xlu1 %306  ;;  %v317_v28 = vpop.permute.xlu0 %316 }
 0x122   : > { %v342_v36 = vcombine.low %v295_v24, %v307_v27  ;;  %v416_v60 = vcombine.low %v391_v57, %v399_v52 }
 0x124   : > { %v349_v46 = vrot.slane %v342_v36, %v1987_v40  ;;  %v423_v3 = vrot.slane %v416_v60, %v1995_v54 }
 0x125   : > { %v323_v31 = vpop.permute.xlu0 %322  ;;  %v314_v32 = vpop.permute.xlu1 %313 }
 0x126   : > { %v350_v37 = vcombine.low %v289_v20, %v323_v31  ;;  %v366_v55 = vcombine.low %v341_v50, %v349_v46 }
 0x128   : > { %v357_v47 = vrot.slane %v350_v37, %v1987_v40  ;;  %v373_v63 = vrot.slane %v366_v55, %v1995_v54 }
 0x129   : > { %v329_v38 = vpop.permute.xlu0 %328  ;;  %v320_v39 = vpop.permute.xlu1 %319 }
 0x12a   : > { %v358_v41 = vcombine.low %v317_v28, %v329_v38 }
 0x12c   : > { %v365_v44 = vrot.slane %v358_v41, %v1987_v40 }
 0x12d   : > { %v326_v48 = vpop.permute.xlu1 %325 }
 0x12e   : > { %v374_v51 = vcombine.low %v357_v47, %v365_v44  ;;  %v400_v53 = vcombine.low %v314_v32, %v326_v48 }
 0x130   : > { %v381_v59 = vrot.slane %v374_v51, %v1995_v54  ;;  %v407_v61 = vrot.slane %v400_v53, %v1987_v40 }
 0x131   : > { %v332_v56 = vpop.permute.xlu1 %331 }
 0x132   : > { %v408_v58 = vcombine.low %v320_v39, %v332_v56  ;;  %v382_v1 = vcombine.low %v373_v63, %v381_v59  ;;  %v383_v5 = vcombine.high %v373_v63, %v381_v59 }
 0x134   : > { %v415_v62 = vrot.slane %v408_v58, %v1987_v40  ;;  %v437_v8 = vshrl.u32 %v382_v1, 16  ;;  %v443_v13 = vshrl.u32 %v383_v5, 16 }
 0x136   : > { %v424_v0 = vcombine.low %v407_v61, %v415_v62 }
 0x138   : > { %v431_v4 = vrot.slane %v424_v0, %v1995_v54 }
 0x13a   : > { %v433_v6 = vcombine.high %v423_v3, %v431_v4  ;;  %v432_v7 = vcombine.low %v423_v3, %v431_v4 }
 0x13c   : > { %v436_v9 = vpack.i.b16 %v432_v7, %v382_v1  ;;  %v438_v10 = vshrl.u32 %v432_v7, 16  ;;  %v442_v11 = vpack.i.b16 %v433_v6, %v383_v5  ;;  %v444_v12 = vshrl.u32 %v433_v6, 16 }
 0x13e   : > { %v447_v14 = vshrl.u32 %v436_v9, 16  ;;  %v439_v15 = vpack.i.b16 %v438_v10, %v437_v8  ;;  %v461_v16 = vshrl.u32 %v442_v11, 16  ;;  %v445_v18 = vpack.i.b16 %v444_v12, %v443_v13 }
 0x13f   : > { %v450_v21 = vshll.u32 %v436_v9, 16  ;;  %v464_v30 = vshll.u32 %v442_v11, 16 }
 0x140   : > { %v449_v19 = vrot.slane %v447_v14, 7  ;;  %v454_v20 = vshrl.u32 %v439_v15, 16  ;;  %v457_v22 = vshll.u32 %v439_v15, 16  ;;  %v468_v23 = vshrl.u32 %v445_v18, 16 }
 0x141   : > { %v463_v27 = vrot.slane %v461_v16, 7  ;;  %v471_v34 = vshll.u32 %v445_v18, 16 }
 0x142   : > { %v489_v24 = vsel %vm2004_vm3, %v449_v19, 0  ;;  %v456_v25 = vrot.slane %v454_v20, 7  ;;  %v452_v26 = vor.u32 %v450_v21, %v449_v19  ;;  %v470_v31 = vrot.slane %v468_v23, 7 }
 0x143   : > { %503 = vrot.lane.b32.xlu0 %v489_v24, %s1901_s23  ;;  %v466_v33 = vor.u32 %v464_v30, %v463_v27  ;;  %v491_v39 = vsel %vm2004_vm3, %v463_v27, 0 }
 0x144   : > { %v490_v28 = vsel %vm2004_vm3, %v456_v25, 0  ;;  %v459_v29 = vor.u32 %v457_v22, %v456_v25  ;;  %v485_v32 = vsel %vm2004_vm3, 0, %v452_v26  ;;  %v473_v36 = vor.u32 %v471_v34, %v470_v31 }
 0x145   : > { %507 = vrot.lane.b32.xlu1 %v490_v28, %s1901_s23  ;;  %v487_v37 = vsel %vm2004_vm3, 0, %v466_v33  ;;  %v492_v41 = vsel %vm2004_vm3, %v470_v31, 0 }
 0x146   : > { %v486_v35 = vsel %vm2004_vm3, 0, %v459_v29  ;;  %v488_v38 = vsel %vm2004_vm3, 0, %v473_v36 }
 0x147   : > { %501 = vrot.lane.b32.xlu0 %v485_v32, %s1901_s23 }
 0x149   : > { %505 = vrot.lane.b32.xlu1 %v486_v35, %s1901_s23 }
 0x14b   : > { %509 = vrot.lane.b32.xlu0 %v487_v37, %s1901_s23 }
 0x14d   : > { %513 = vrot.lane.b32.xlu1 %v488_v38, %s1901_s23 }
 0x14f   : > { %511 = vrot.lane.b32.xlu0 %v491_v39, %s1901_s23 }
 0x151   : > { %515 = vrot.lane.b32.xlu1 %v492_v41, %s1901_s23 }
 0x1b5   : > { %v504_v42 = vpop.permute.xlu0 %503 }
 0x1b6   : > { %v522_v43 = vsel %vm517_vm4, 0, %v504_v42 }
 0x1b7   : > { %v537_v44 = vsel %vm535_vm5, %v522_v43, 0  ;;  %v508_v45 = vpop.permute.xlu1 %507 }
 0x1b8   : > { %v571_v46 = vshll.u32 %v537_v44, 16  ;;  %v526_v47 = vsel %vm517_vm4, 0, %v508_v45  ;;  %v627_v52 = vrot.slane %v537_v44, 1 }
 0x1b9   : > { %v539_v48 = vsel %vm535_vm5, %v526_v47, 0  ;;  %v502_v49 = vpop.permute.xlu0 %501 }
 0x1ba   : > { %v581_v50 = vshll.u32 %v539_v48, 16  ;;  %v520_v51 = vsel %vm517_vm4, 0, %v502_v49  ;;  %v573_v56 = vrot.slane %v571_v46, 1  ;;  %v630_v57 = vrot.slane %v539_v48, 1 }
 0x1bb   : > { %v2030_v53 = vsel %vm535_vm5, %v520_v51, 0  ;;  %v506_v55 = vpop.permute.xlu1 %505 }
 0x1bc   : > { %v524_v58 = vsel %vm517_vm4, 0, %v506_v55  ;;  %548 = vrot.lane.b32.xlu0 %v2030_v53, %s1902_s24  ;;  %v626_v59 = vrot.slane %v2030_v53, 1  ;;  %v583_v60 = vrot.slane %v581_v50, 1  ;;  %v565_v63 = vshrl.u32 %v2030_v53, 16 }
 0x1bd   : > { %v538_v61 = vsel %vm535_vm5, %v524_v58, 0  ;;  %v510_v62 = vpop.permute.xlu0 %509  ;;  %v567_v0 = vshll.u32 %v2030_v53, 16 }
 0x1be   : > { %v528_v1 = vsel %vm517_vm4, 0, %v510_v62  ;;  %550 = vrot.lane.b32.xlu1 %v538_v61, %s1902_s24  ;;  %v2042_v3 = vsel %vm625_vm6, %v626_v59, %v627_v52  ;;  %v629_v4 = vrot.slane %v538_v61, 1  ;;  %v575_v5 = vshrl.u32 %v538_v61, 16 }
 0x1bf   : > { %v540_v6 = vsel %vm535_vm5, %v528_v1, 0  ;;  %v514_v7 = vpop.permute.xlu1 %513  ;;  %v746_v8 = vshrl.u32 %v2042_v3, 16  ;;  %v569_v9 = vrot.slane %v567_v0, 1  ;;  %v577_v10 = vshll.u32 %v538_v61, 16 }
 0x1c0   : > { %v532_v11 = vsel %vm517_vm4, 0, %v514_v7  ;;  %552 = vrot.lane.b32.xlu0 %v540_v6, %s1902_s24  ;;  %v631_v12 = vsel %vm625_vm6, %v629_v4, %v630_v57  ;;  %v632_v13 = vrot.slane %v540_v6, 1  ;;  %v585_v14 = vshrl.u32 %v540_v6, 16 }
 0x1c1   : > { %v542_v15 = vsel %vm535_vm5, %v532_v11, 0  ;;  %v512_v16 = vpop.permute.xlu0 %511  ;;  %v747_v17 = vshrl.u32 %v631_v12, 16  ;;  %v570_v18 = vor.u32 %v569_v9, %v565_v63  ;;  %v579_v19 = vrot.slane %v577_v10, 1 }
 0x1c2   : > { %v530_v20 = vsel %vm517_vm4, 0, %v512_v16  ;;  %554 = vrot.lane.b32.xlu1 %v542_v15, %s1902_s24  ;;  %v635_v21 = vrot.slane %v542_v15, 1  ;;  %v587_v22 = vshll.u32 %v540_v6, 16  ;;  %v595_v23 = vshrl.u32 %v542_v15, 16 }
 0x1c3   : > { %v541_v24 = vsel %vm535_vm5, %v530_v20, 0  ;;  %v516_v25 = vpop.permute.xlu1 %515  ;;  %v574_v26 = vsel %vm564_vm7, %v570_v18, %v573_v56  ;;  %v580_v27 = vor.u32 %v579_v19, %v575_v5  ;;  %v597_v28 = vshll.u32 %v542_v15, 16 }
 0x1c4   : > { %v591_v29 = vshll.u32 %v541_v24, 16  ;;  %v633_v30 = vrot.slane %v541_v24, 1  ;;  %v534_v31 = vsel %vm517_vm4, 0, %v516_v25  ;;  %556 = vrot.lane.b32.xlu0 %v2030_v53, %s1903_s25  ;;  %v698_v32 = vshrl.u32 %v574_v26, 16 }
 0x1c5   : > { %v543_v33 = vsel %vm535_vm5, %v534_v31, 0  ;;  %v584_v34 = vsel %vm564_vm7, %v580_v27, %v583_v60  ;;  %v589_v35 = vrot.slane %v587_v22, 1  ;;  %v599_v36 = vrot.slane %v597_v28, 1 }
 0x1c6   : > { %v593_v37 = vrot.slane %v591_v29, 1  ;;  %v601_v38 = vshll.u32 %v543_v33, 16  ;;  %v636_v39 = vrot.slane %v543_v33, 1  ;;  %558 = vrot.lane.b32.xlu1 %v538_v61, %s1903_s25  ;;  %v634_v41 = vsel %vm625_vm6, %v632_v13, %v633_v30 }
 0x1c7   : > { %v754_v42 = vshrl.u32 %v634_v41, 16  ;;  %v699_v43 = vshrl.u32 %v584_v34, 16  ;;  %v590_v44 = vor.u32 %v589_v35, %v585_v14  ;;  %v600_v45 = vor.u32 %v599_v36, %v595_v23 }
 0x1c8   : > { %v603_v46 = vrot.slane %v601_v38, 1  ;;  %560 = vrot.lane.b32.xlu0 %v540_v6, %s1903_s25  ;;  %v637_v47 = vsel %vm625_vm6, %v635_v21, %v636_v39  ;;  %v654_v48 = vpack.i.b16 %v538_v61, %v2030_v53  ;;  %v2064_v49 = vpack.i.b16 %v575_v5, %v565_v63 }
 0x1c9   : > { %v755_v50 = vshrl.u32 %v637_v47, 16  ;;  %v594_v51 = vsel %vm564_vm7, %v590_v44, %v593_v37  ;;  %v658_v52 = vpack.i.b16 %v542_v15, %v540_v6  ;;  %v2067_v55 = vpack.i.b16 %v595_v23, %v585_v14 }
 0x1ca   : > { %562 = vrot.lane.b32.xlu1 %v542_v15, %s1903_s25  ;;  %v706_v56 = vshrl.u32 %v594_v51, 16  ;;  %v604_v57 = vsel %vm564_vm7, %v600_v45, %v603_v46  ;;  %v2071_v58 = vpack.i.b16 %v584_v34, %v574_v26  ;;  %v2073_v59 = vpack.i.b16 %v699_v43, %v698_v32 }
 0x1cb   : > { %v707_v60 = vshrl.u32 %v604_v57, 16  ;;  %v2075_v62 = vpack.i.b16 %v604_v57, %v594_v51  ;;  %v2078_v53 = vpack.i.b16 %v631_v12, %v2042_v3  ;;  %v2080_v61 = vpack.i.b16 %v747_v17, %v746_v8 }
 0x1cc   : > { %638 = vrot.lane.b32.xlu0 %v2042_v3, %s1902_s24  ;;  %v2084_v63 = vpack.i.b16 %v637_v47, %v634_v41  ;;  %v2086_v0 = vpack.i.b16 %v755_v50, %v754_v42 }
 0x1cd   : > { %v2088_v1 = vpack.i.b16 %v707_v60, %v706_v56 }
 0x1ce   : > { %640 = vrot.lane.b32.xlu1 %v631_v12, %s1902_s24 }
 0x1d0   : > { %642 = vrot.lane.b32.xlu0 %v634_v41, %s1902_s24 }
 0x1d2   : > { %644 = vrot.lane.b32.xlu1 %v637_v47, %s1902_s24 }
 0x1d4   : > { %646 = vrot.lane.b32.xlu0 %v2042_v3, %s1903_s25 }
 0x1d6   : > { %648 = vrot.lane.b32.xlu1 %v631_v12, %s1903_s25 }
 0x1d8   : > { %650 = vrot.lane.b32.xlu0 %v634_v41, %s1903_s25 }
 0x1da   : > { %652 = vrot.lane.b32.xlu1 %v637_v47, %s1903_s25 }
 0x1dc   : > { %605 = vrot.lane.b32.xlu0 %v574_v26, %s1902_s24 }
 0x1de   : > { %607 = vrot.lane.b32.xlu1 %v584_v34, %s1902_s24 }
 0x1e0   : > { %609 = vrot.lane.b32.xlu0 %v594_v51, %s1902_s24 }
 0x1e2   : > { %611 = vrot.lane.b32.xlu1 %v604_v57, %s1902_s24 }
 0x1e4   : > { %613 = vrot.lane.b32.xlu0 %v574_v26, %s1903_s25 }
 0x1e6   : > { %615 = vrot.lane.b32.xlu1 %v584_v34, %s1903_s25 }
 0x1e8   : > { %617 = vrot.lane.b32.xlu0 %v594_v51, %s1903_s25 }
 0x1ea   : > { %619 = vrot.lane.b32.xlu1 %v604_v57, %s1903_s25 }
 0x22e   : > { %v549_v3 = vpop.permute.xlu0 %548 }
 0x22f   : > { %v666_v9 = vshrl.u32 %v549_v3, 16 }
 0x230   : > { %v551_v4 = vpop.permute.xlu1 %550 }
 0x231   : > { %v664_v5 = vpack.i.b16 %v551_v4, %v549_v3  ;;  %v667_v7 = vshrl.u32 %v551_v4, 16 }
 0x232   : > { %v553_v6 = vpop.permute.xlu0 %552 }
 0x233   : > { %v795_v10 = vcombine.low %v654_v48, %v664_v5  ;;  %v796_v11 = vcombine.high %v654_v48, %v664_v5  ;;  %v674_v12 = vshrl.u32 %v553_v6, 16  ;;  %v2106_v16 = vpack.i.b16 %v667_v7, %v666_v9 }
 0x234   : > { %v555_v8 = vpop.permute.xlu1 %554 }
 0x235   : > { %v672_v13 = vpack.i.b16 %v555_v8, %v553_v6  ;;  %v675_v14 = vshrl.u32 %v555_v8, 16  ;;  %v2111_v21 = vrot.slane %v795_v10, %v1987_v40  ;;  %v810_v22 = vrot.slane %v796_v11, %v1987_v40 }
 0x236   : > { %v557_v15 = vpop.permute.xlu0 %556  ;;  %v932_v28 = vcombine.high %v2064_v49, %v2106_v16 }
 0x237   : > { %v2108_v17 = vpack.i.b16 %v675_v14, %v674_v12  ;;  %v811_v18 = vcombine.low %v658_v52, %v672_v13  ;;  %v812_v19 = vcombine.high %v658_v52, %v672_v13 }
 0x238   : > { %v559_v20 = vpop.permute.xlu1 %558  ;;  %v2134_v39 = vrot.slane %v932_v28, %v1987_v40 }
 0x239   : > { %v2115_v23 = vrot.slane %v811_v18, %v1987_v40  ;;  %v826_v24 = vrot.slane %v812_v19, %v1987_v40  ;;  %v948_v25 = vcombine.high %v2067_v55, %v2108_v17  ;;  %v680_v26 = vpack.i.b16 %v559_v20, %v557_v15 }
 0x23a   : > { %v561_v27 = vpop.permute.xlu0 %560  ;;  %v683_v52 = vshrl.u32 %v559_v20, 16 }
 0x23b   : > { %v859_v29 = vcombine.low %v2111_v21, %v2115_v23  ;;  %v860_v30 = vcombine.high %v2111_v21, %v2115_v23  ;;  %v875_v31 = vcombine.low %v810_v22, %v826_v24  ;;  %v876_v32 = vcombine.high %v810_v22, %v826_v24 }
 0x23c   : > { %v563_v33 = vpop.permute.xlu1 %562  ;;  %v2127_v34 = vrot.slane %v948_v25, %v1987_v40  ;;  %v827_v35 = vcombine.low %v680_v26, %v2071_v58  ;;  %v828_v38 = vcombine.high %v680_v26, %v2071_v58  ;;  %v690_v47 = vshrl.u32 %v561_v27, 16 }
 0x23d   : > { %v688_v36 = vpack.i.b16 %v563_v33, %v561_v27  ;;  %v691_v41 = vshrl.u32 %v563_v33, 16  ;;  %v682_v58 = vshrl.u32 %v557_v15, 16  ;;  %v2161_v12 = vrot.slane %v875_v31, %v1995_v54 }
 0x23e   : > { %v2130_v37 = vpop.permute.xlu0 %638  ;;  %v835_v46 = vrot.slane %v827_v35, %v1987_v40  ;;  %v1011_v51 = vcombine.low %v2134_v39, %v2127_v34  ;;  %v842_v56 = vrot.slane %v828_v38, %v1987_v40  ;;  %v2172_v19 = vrot.slane %v876_v32, %v1995_v54 }
 0x23f   : > { %v843_v42 = vcombine.low %v688_v36, %v2075_v62  ;;  %v844_v44 = vcombine.high %v688_v36, %v2075_v62  ;;  %v2150_v60 = vpack.i.b16 %v691_v41, %v690_v47  ;;  %v2158_v11 = vpack.i.b16 %v683_v52, %v682_v58 }
 0x240   : > { %v2137_v43 = vpop.permute.xlu1 %640 }
 0x241   : > { %v760_v45 = vpack.i.b16 %v2137_v43, %v2130_v37  ;;  %v851_v48 = vrot.slane %v843_v42, %v1987_v40  ;;  %v858_v57 = vrot.slane %v844_v44, %v1987_v40  ;;  %v980_v20 = vcombine.high %v2150_v60, %v2088_v1 }
 0x242   : > { %v2144_v50 = vpop.permute.xlu0 %642  ;;  %v964_v32 = vcombine.high %v2158_v11, %v2073_v59 }
 0x243   : > { %v891_v62 = vcombine.low %v835_v46, %v851_v48  ;;  %v892_v3 = vcombine.high %v835_v46, %v851_v48  ;;  %v907_v5 = vcombine.low %v842_v56, %v858_v57  ;;  %v908_v6 = vcombine.high %v842_v56, %v858_v57 }
 0x244   : > { %v2152_v4 = vpop.permute.xlu1 %644  ;;  %v1099_v7 = vcombine.low %v2078_v53, %v760_v45  ;;  %v1100_v8 = vcombine.high %v2078_v53, %v760_v45  ;;  %v2209_v46 = vrot.slane %v859_v29, %v1995_v54  ;;  %v2212_v47 = vrot.slane %v980_v20, %v1987_v40 }
 0x245   : > { %v768_v9 = vpack.i.b16 %v2152_v4, %v2144_v50  ;;  %v2164_v13 = vrot.slane %v907_v5, %v1995_v54  ;;  %v2167_v14 = vrot.slane %v908_v6, %v1995_v54  ;;  %v2198_v36 = vrot.slane %v891_v62, %v1995_v54 }
 0x246   : > { %v647_v10 = vpop.permute.xlu0 %646  ;;  %v2177_v22 = vrot.slane %v1099_v7, %v1987_v40  ;;  %v2180_v24 = vrot.slane %v1100_v8, %v1987_v40  ;;  %v2224_v57 = vrot.slane %v860_v30, %v1995_v54  ;;  %v2230_v5 = vrot.slane %v892_v3, %v1995_v54 }
 0x247   : > { %v1115_v15 = vcombine.low %v2084_v63, %v768_v9  ;;  %v1116_v18 = vcombine.high %v2084_v63, %v768_v9  ;;  %v928_v25 = vcombine.high %v2161_v12, %v2164_v13  ;;  %v929_v31 = vcombine.low %v2172_v19, %v2167_v14 }
 0x248   : > { %v649_v53 = vpop.permute.xlu1 %648  ;;  %v778_v33 = vshrl.u32 %v647_v10, 16  ;;  %v924_v29 = vcombine.high %v2209_v46, %v2198_v36  ;;  %v931_v6 = vcombine.low %v2064_v49, %v2106_v16  ;;  %v2235_v7 = vrot.slane %v964_v32, %v1987_v40 }
 0x249   : > { %v2185_v26 = vrot.slane %v1115_v15, %v1987_v40  ;;  %v2188_v63 = vrot.slane %v1116_v18, %v1987_v40  ;;  %v779_v27 = vshrl.u32 %v649_v53, 16  ;;  %v2194_v35 = vpack.i.b16 %v649_v53, %v647_v10  ;;  %1546 = vrot.lane.b32.xlu0 %v928_v25, %s1898_s22 }
 0x24a   : > { %v651_v28 = vpop.permute.xlu0 %650  ;;  %v947_v3 = vcombine.low %v2067_v55, %v2108_v17  ;;  %v771_v8 = vshrl.u32 %v2152_v4, 16  ;;  %v925_v49 = vcombine.low %v2224_v57, %v2230_v5  ;;  %v963_v16 = vcombine.low %v2158_v11, %v2073_v59 }
 0x24b   : > { %v1163_v38 = vcombine.low %v2177_v22, %v2185_v26  ;;  %v1179_v42 = vcombine.low %v2180_v24, %v2188_v63  ;;  %v1180_v44 = vcombine.high %v2180_v24, %v2188_v63  ;;  %v2214_v48 = vpack.i.b16 %v779_v27, %v778_v33 }
 0x24c   : > { %v653_v45 = vpop.permute.xlu1 %652  ;;  %v786_v58 = vshrl.u32 %v651_v28, 16  ;;  %v2239_v21 = vrot.slane %v2194_v35, %v1987_v40  ;;  %v979_v10 = vcombine.low %v2150_v60, %v2088_v1  ;;  %v1043_v55 = vcombine.low %v2235_v7, %v2212_v47 }
 0x24d   : > { %v2216_v52 = vpack.i.b16 %v653_v45, %v651_v28  ;;  %v787_v62 = vshrl.u32 %v653_v45, 16  ;;  %1564 = vrot.lane.b32.xlu0 %v929_v31, %s1897_s20  ;;  %v763_v17 = vshrl.u32 %v2137_v43, 16  ;;  %v770_v4 = vshrl.u32 %v2144_v50, 16 }
 0x24e   : > { %v2218_v56 = vpop.permute.xlu0 %605  ;;  %v2268_v53 = vrot.slane %v2214_v48, %v1987_v40  ;;  %v2281_v11 = vrot.slane %v1011_v51, %v1995_v54  ;;  %v2284_v43 = vrot.slane %v1043_v55, %v1995_v54  ;;  %v930_v50 = vcombine.high %v2172_v19, %v2167_v14 }
 0x24f   : > { %v2243_v23 = vrot.slane %v2216_v52, %v1987_v40  ;;  %v2250_v9 = vpack.i.b16 %v787_v62, %v786_v58  ;;  %v2289_v20 = vrot.slane %v947_v3, %v1987_v40  ;;  %v762_v25 = vshrl.u32 %v2130_v37, 16 }
 0x250   : > { %v2245_v30 = vpop.permute.xlu1 %607  ;;  %v772_v27 = vpack.i.b16 %v771_v8, %v770_v4  ;;  %v987_v31 = vrot.slane %v979_v10, %v1987_v40  ;;  %v1063_v51 = vcombine.low %v2281_v11, %v2284_v43  ;;  %v1064_v32 = vcombine.high %v2281_v11, %v2284_v43 }
 0x251   : > { %v1370_v15 = vcombine.high %v2239_v21, %v2243_v23  ;;  %v2272_v59 = vrot.slane %v2250_v9, %v1987_v40  ;;  %v926_v14 = vcombine.high %v2224_v57, %v2230_v5  ;;  %v764_v19 = vpack.i.b16 %v763_v17, %v762_v25 }
 0x252   : > { %v2260_v18 = vpop.permute.xlu0 %609  ;;  %v939_v45 = vrot.slane %v931_v6, %v1987_v40  ;;  %v971_v58 = vrot.slane %v963_v16, %v1987_v40  ;;  %v1251_v3 = vcombine.low %v2086_v0, %v772_v27  ;;  %v1252_v8 = vcombine.high %v2086_v0, %v772_v27 }
 0x253   : > { %v1384_v60 = vrot.slane %v1370_v15, %v1995_v54  ;;  %v1436_v28 = vcombine.high %v2268_v53, %v2272_v59  ;;  %v1235_v6 = vcombine.low %v2080_v61, %v764_v19  ;;  %v1236_v16 = vcombine.high %v2080_v61, %v764_v19 }
 0x254   : > { %v2274_v1 = vpop.permute.xlu1 %611  ;;  %v995_v15 = vcombine.low %v939_v45, %v2289_v20  ;;  %v1027_v55 = vcombine.low %v971_v58, %v987_v31  ;;  %v712_v17 = vpack.i.b16 %v2245_v30, %v2218_v56  ;;  %v2326_v4 = vpack.i.b16 %v1890_v2, %v1890_v2 }
 0x255   : > { %1505 = vrot.lane.b32.xlu1 %v1384_v60, %s1897_s20  ;;  %v2305_v37 = vrot.slane %v1436_v28, %v1995_v54  ;;  %v1402_v0 = vcombine.high %v1384_v60, %v1890_v2  ;;  %v1012_v61 = vcombine.high %v2134_v39, %v2127_v34  ;;  %v2339_v25 = vrot.slane %v1251_v3, %v1987_v40 }
 0x256   : > { %v2302_v33 = vpop.permute.xlu0 %613  ;;  %v2334_v43 = vrot.slane %v1027_v55, %v1995_v54  ;;  %v2342_v60 = vrot.slane %v1252_v8, %v1987_v40  ;;  %v720_v27 = vpack.i.b16 %v2274_v1, %v2260_v18  ;;  %v2354_v3 = vrot.slane %v1235_v6, %v1987_v40 }
 0x257   : > { %1514 = vrot.lane.b32.xlu0 %v2305_v37, %s1892_s15  ;;  %v2357_v8 = vrot.slane %v1236_v16, %v1987_v40  ;;  %v2364_v41 = vrot.slane %v1012_v61, %v1995_v54  ;;  %v996_v34 = vcombine.high %v939_v45, %v2289_v20  ;;  %v1028_v16 = vcombine.high %v971_v58, %v987_v31 }
 0x258   : > { %v2309_v62 = vpop.permute.xlu1 %615  ;;  %v923_v24 = vcombine.low %v2209_v46, %v2198_v36 }
 0x259   : > { %v728_v10 = vpack.i.b16 %v2309_v62, %v2302_v33  ;;  %1483 = vrot.lane.b32.xlu1 %v924_v29, %s1898_s22  ;;  %v2331_v29 = vrot.slane %v995_v15, %v1995_v54  ;;  %v1315_v39 = vcombine.low %v2357_v8, %v2342_v60  ;;  %v2385_v45 = vrot.slane %v996_v34, %v1995_v54 }
 0x25a   : > { %v618_v19 = vpop.permute.xlu0 %617  ;;  %v2388_v58 = vrot.slane %v1028_v16, %v1995_v54  ;;  %v731_v16 = vshrl.u32 %v2309_v62, 16 }
 0x25b   : > { %v1067_v28 = vcombine.low %v712_v17, %v728_v10  ;;  %1523 = vrot.lane.b32.xlu0 %v1402_v0, %s1895_s18  ;;  %v1068_v15 = vcombine.high %v712_v17, %v728_v10  ;;  %v1354_v0 = vcombine.high %v2216_v52, %v2326_v4  ;;  %v1044_v10 = vcombine.high %v2235_v7, %v2212_v47 }
 0x25c   : > { %v2328_v11 = vpop.permute.xlu1 %619  ;;  %v1299_v52 = vcombine.low %v2354_v3, %v2339_v25  ;;  %v1062_v57 = vcombine.high %v2385_v45, %v2388_v58 }
 0x25d   : > { %v736_v55 = vpack.i.b16 %v2328_v11, %v618_v19  ;;  %1501 = vrot.lane.b32.xlu1 %v925_v49, %s1897_s20  ;;  %v2369_v6 = vrot.slane %v1044_v10, %v1995_v54  ;;  %v1075_v47 = vrot.slane %v1067_v28, %v1987_v40  ;;  %v1082_v7 = vrot.slane %v1068_v15, %v1987_v40 }
 0x25e   : > { %v1435_v15 = vcombine.low %v2268_v53, %v2272_v59  ;;  %v2413_v53 = vrot.slane %v1354_v0, %v1987_v40  ;;  %v739_v59 = vshrl.u32 %v2328_v11, 16  ;;  %v715_v11 = vshrl.u32 %v2245_v30, 16 }
 0x25f   : > { %v1083_v17 = vcombine.low %v720_v27, %v736_v55  ;;  %v1084_v49 = vcombine.high %v720_v27, %v736_v55  ;;  %1537 = vrot.lane.b32.xlu0 %v1063_v51, %s1896_s19  ;;  %v1369_v51 = vcombine.low %v2239_v21, %v2243_v23  ;;  %v1065_v31 = vcombine.low %v2364_v41, %v2369_v6 }
 0x260   : > { %v1061_v21 = vcombine.low %v2385_v45, %v2388_v58  ;;  %v1066_v23 = vcombine.high %v2364_v41, %v2369_v6  ;;  %v738_v10 = vshrl.u32 %v618_v19, 16  ;;  %v730_v30 = vshrl.u32 %v2302_v33, 16 }
 0x261   : > { %v1091_v61 = vrot.slane %v1083_v17, %v1987_v40  ;;  %v1098_v20 = vrot.slane %v1084_v49, %v1987_v40  ;;  %1582 = vrot.lane.b32.xlu1 %v930_v50, %s1895_s18  ;;  %v1339_v50 = vcombine.high %v2194_v35, %v2326_v4  ;;  %v2410_v35 = vrot.slane %v1179_v42, %v1995_v54 }
 0x262   : > { %v722_v17 = vshrl.u32 %v2260_v18, 16  ;;  %v723_v49 = vshrl.u32 %v2274_v1, 16  ;;  %v740_v19 = vpack.i.b16 %v739_v59, %v738_v10  ;;  %v1300_v33 = vcombine.high %v2354_v3, %v2339_v25 }
 0x263   : > { %v1131_v27 = vcombine.low %v1075_v47, %v1091_v61  ;;  %v1147_v28 = vcombine.low %v1082_v7, %v1098_v20  ;;  %1555 = vrot.lane.b32.xlu0 %v1064_v32, %s1894_s17  ;;  %v2417_v32 = vrot.slane %v1369_v51, %v1995_v54  ;;  %v1148_v5 = vcombine.high %v1082_v7, %v1098_v20 }
 0x264   : > { %v2430_v0 = vrot.slane %v1339_v50, %v1987_v40  ;;  %v2443_v7 = vrot.slane %v1163_v38, %v1995_v54  ;;  %v1132_v62 = vcombine.high %v1075_v47, %v1091_v61  ;;  %v714_v38 = vshrl.u32 %v2218_v56, 16 }
 0x265   : > { %1519 = vrot.lane.b32.xlu1 %v926_v14, %s1895_s18  ;;  %v2404_v55 = vrot.slane %v1147_v28, %v1995_v54  ;;  %v2422_v14 = vrot.slane %v1435_v15, %v1995_v54  ;;  %v2427_v42 = vrot.slane %v1131_v27, %v1995_v54  ;;  %v1401_v18 = vcombine.high %v2417_v32, %v1890_v2 }
 0x266   : > { %v1386_v1 = vcombine.high %v2430_v0, %v2413_v53  ;;  %v1162_v51 = vrot.slane %v1148_v5, %v1995_v54  ;;  %v1316_v27 = vcombine.high %v2357_v8, %v2342_v60  ;;  %v724_v28 = vpack.i.b16 %v723_v49, %v722_v17 }
 0x267   : > { %v1200_v34 = vcombine.high %v2404_v55, %v2410_v35  ;;  %v1196_v20 = vcombine.high %v2427_v42, %v2443_v7  ;;  %v732_v15 = vpack.i.b16 %v731_v16, %v730_v30  ;;  %v1194_v47 = vrot.slane %v1180_v44, %v1995_v54 }
 0x268   : > { %v716_v61 = vpack.i.b16 %v715_v11, %v714_v38  ;;  %v2465_v50 = vrot.slane %v1386_v1, %v1995_v54  ;;  %v1220_v59 = vcombine.high %v724_v28, %v740_v19  ;;  %v1146_v5 = vrot.slane %v1132_v62, %v1995_v54 }
 0x269   : > { %1478 = vrot.lane.b32.xlu1 %v2422_v14, %s1896_s19  ;;  %1548 = vrot.lane.b32.xlu0 %v1200_v34, %s1898_s22  ;;  %v1201_v56 = vcombine.low %v1162_v51, %v1194_v47  ;;  %v927_v34 = vcombine.low %v2161_v12, %v2164_v13  ;;  %v2669_v10 = vcombine.high %v2177_v22, %v2185_v26 }
 0x26a   : > { %v1204_v63 = vcombine.high %v716_v61, %v732_v15  ;;  %v1199_v44 = vcombine.low %v2404_v55, %v2410_v35  ;;  %v1195_v11 = vcombine.low %v2427_v42, %v2443_v7  ;;  %v1219_v49 = vcombine.low %v724_v28, %v740_v19 }
 0x26b   : > { %v1178_v17 = vrot.slane %v2669_v10, %v1995_v54  ;;  %v1234_v16 = vrot.slane %v1220_v59, %v1987_v40  ;;  %v1203_v26 = vcombine.low %v716_v61, %v732_v15  ;;  %v1202_v62 = vcombine.high %v1162_v51, %v1194_v47 }
 0x26c   : > { %v1218_v30 = vrot.slane %v1204_v63, %v1987_v40  ;;  %v1227_v1 = vrot.slane %v1219_v49, %v1987_v40  ;;  %v2671_v19 = vcombine.high %v2331_v29, %v2334_v43  ;;  %v1323_v51 = vrot.slane %v1315_v39, %v1995_v54 }
 0x26d   : > { %1487 = vrot.lane.b32.xlu1 %v1401_v18, %s1898_s22  ;;  %1485 = vrot.lane.b32.xlu0 %v1196_v20, %s1898_s22  ;;  %v1197_v22 = vcombine.low %v1146_v5, %v1178_v17  ;;  %v2670_v18 = vcombine.low %v2331_v29, %v2334_v43  ;;  %v1211_v38 = vrot.slane %v1203_v26, %v1987_v40 }
 0x26e   : > { %v1283_v20 = vcombine.low %v1218_v30, %v1234_v16  ;;  %v1198_v28 = vcombine.high %v1146_v5, %v1178_v17  ;;  %v1420_v29 = vcombine.high %v2250_v9, %v2326_v4  ;;  %v1405_v59 = vcombine.high %v2214_v48, %v2326_v4 }
 0x26f   : > { %v1267_v61 = vcombine.low %v1211_v38, %v1227_v1  ;;  %v1307_v39 = vrot.slane %v1299_v52, %v1995_v54  ;;  %v1385_v48 = vcombine.low %v2430_v0, %v2413_v53  ;;  %v1284_v5 = vcombine.high %v1218_v30, %v1234_v16 }
 0x270   : > { %v1291_v15 = vrot.slane %v1283_v20, %v1995_v54  ;;  %v1434_v9 = vrot.slane %v1420_v29, %v1987_v40  ;;  %v1330_v45 = vrot.slane %v1316_v27, %v1995_v54  ;;  %v1314_v0 = vrot.slane %v1300_v33, %v1995_v54 }
 0x271   : > { %1568 = vrot.lane.b32.xlu1 %v2465_v50, %s1897_s20  ;;  %1566 = vrot.lane.b32.xlu0 %v1201_v56, %s1897_s20  ;;  %v1275_v47 = vrot.slane %v1267_v61, %v1995_v54  ;;  %v1419_v56 = vrot.slane %v1405_v59, %v1987_v40  ;;  %v2536_v40 = vrot.slane %v1385_v48, %v1995_v54 }
 0x272   : > { %v1335_v43 = vcombine.low %v1291_v15, %v1323_v51  ;;  %v1336_v4 = vcombine.high %v1291_v15, %v1323_v51  ;;  %v1298_v52 = vrot.slane %v1284_v5, %v1995_v54  ;;  %v1467_v10 = vcombine.high %v2422_v14, %v1890_v2 }
 0x273   : > { %v1332_v6 = vcombine.high %v1275_v47, %v1307_v39  ;;  %v1403_v58 = vcombine.high %v2536_v40, %v1890_v2  ;;  %v1452_v8 = vcombine.high %v1419_v56, %v1434_v9  ;;  %v1404_v25 = vcombine.high %v2465_v50, %v1890_v2 }
 0x274   : > { %v1337_v53 = vcombine.low %v1298_v52, %v1330_v45  ;;  %v1338_v17 = vcombine.high %v1298_v52, %v1330_v45  ;;  %v1468_v33 = vcombine.high %v2305_v37, %v1890_v2 }
 0x275   : > { %1474 = vrot.lane.b32.xlu1 %v2670_v18, %s1896_s19  ;;  %1503 = vrot.lane.b32.xlu0 %v1197_v22, %s1897_s20  ;;  %v1466_v27 = vrot.slane %v1452_v8, %v1995_v54 }
 0x279   : > { %1492 = vrot.lane.b32.xlu1 %v2671_v19, %s1894_s17  ;;  %1584 = vrot.lane.b32.xlu0 %v1202_v62, %s1895_s18 }
 0x27d   : > { %1573 = vrot.lane.b32.xlu1 %v1065_v31, %s1892_s15  ;;  %1521 = vrot.lane.b32.xlu0 %v1198_v28, %s1895_s18  ;;  %v1331_v31 = vcombine.low %v1275_v47, %v1307_v39 }
 0x281   : > { %1510 = vrot.lane.b32.xlu1 %v1061_v21, %s1892_s15  ;;  %1539 = vrot.lane.b32.xlu0 %v1335_v43, %s1896_s19  ;;  %v1451_v21 = vcombine.low %v1419_v56, %v1434_v9 }
 0x283   : > { %v1459_v41 = vrot.slane %v1451_v21, %v1995_v54 }
 0x285   : > { %1591 = vrot.lane.b32.xlu1 %v1066_v23, %s1893_s16  ;;  %1476 = vrot.lane.b32.xlu0 %v1331_v31, %s1896_s19  ;;  %v1268_v23 = vcombine.high %v1211_v38, %v1227_v1  ;;  %v1469_v14 = vcombine.high %v1459_v41, %v1890_v2 }
 0x289   : > { %1528 = vrot.lane.b32.xlu1 %v1062_v57, %s1893_s16  ;;  %1557 = vrot.lane.b32.xlu0 %v1336_v4, %s1894_s17  ;;  %v1282_v57 = vrot.slane %v1268_v23, %v1995_v54  ;;  %v1470_v54 = vcombine.high %v1466_v27, %v1890_v2 }
 0x28b   : > { %v1333_v60 = vcombine.low %v1282_v57, %v1314_v0  ;;  %v1334_v3 = vcombine.high %v1282_v57, %v1314_v0 }
 0x28d   : > { %1541 = vrot.lane.b32.xlu1 %v1459_v41, %s1896_s19  ;;  %1494 = vrot.lane.b32.xlu0 %v1332_v6, %s1894_s17 }
 0x291   : > { %1550 = vrot.lane.b32.xlu1 %v1403_v58, %s1898_s22  ;;  %1575 = vrot.lane.b32.xlu0 %v1337_v53, %s1892_s15 }
 0x295   : > { %1496 = vrot.lane.b32.xlu1 %v1467_v10, %s1894_s17  ;;  %1512 = vrot.lane.b32.xlu0 %v1333_v60, %s1892_s15 }
 0x299   : > { %1577 = vrot.lane.b32.xlu1 %v1466_v27, %s1892_s15  ;;  %1593 = vrot.lane.b32.xlu0 %v1338_v17, %s1893_s16 }
 0x29d   : > { %1586 = vrot.lane.b32.xlu1 %v1404_v25, %s1895_s18  ;;  %1530 = vrot.lane.b32.xlu0 %v1334_v3, %s1893_s16 }
 0x2a1   : > { %1559 = vrot.lane.b32.xlu1 %v1469_v14, %s1894_s17  ;;  %1532 = vrot.lane.b32.xlu0 %v1468_v33, %s1893_s16 }
 0x2a5   : > { %1595 = vrot.lane.b32.xlu1 %v1470_v54, %s1893_s16 }
 0x2bb   : > { %v1547_v63 = vpop.permute.xlu0 %1546 }
 0x2bf   : > { %v1565_v50 = vpop.permute.xlu0 %1564 }
 0x2c7   : > { %v2573_v49 = vpop.permute.xlu1 %1505 }
 0x2c9   : > { %v2575_v16 = vpop.permute.xlu0 %1514 }
 0x2cb   : > { %v1484_v22 = vpop.permute.xlu1 %1483 }
 0x2cd   : > { %v2577_v26 = vpop.permute.xlu0 %1523 }
 0x2cf   : > { %v1502_v30 = vpop.permute.xlu1 %1501 }
 0x2d1   : > { %v1538_v18 = vpop.permute.xlu0 %1537 }
 0x2d2   : > { %v1653_v47 = vsel %vm1597_vm8, %v927_v34, %v1538_v18 }
 0x2d3   : > { %v1583_v37 = vpop.permute.xlu1 %1582  ;;  %v1661_v59 = vsel %vm1607_vm9, %v1653_v47, %v1547_v63 }
 0x2d5   : > { %v1556_v1 = vpop.permute.xlu0 %1555 }
 0x2d6   : > { %v1667_v31 = vsel %vm1614_vm10, %v1661_v59, %v1556_v1  ;;  %v1698_v59 = vld [vmem:[%s2663_s3] sm:$0x3] }
 0x2d7   : > { %v1520_v62 = vpop.permute.xlu1 %1519  ;;  %v1673_v12 = vsel %vm1621_vm11, %v1667_v31, %v1565_v50 }
 0x2db   : > { %v1479_v20 = vpop.permute.xlu1 %1478  ;;  %v1549_v38 = vpop.permute.xlu0 %1548 }
 0x2dc   : > { %v1606_v25 = vsel %vm1597_vm8, %v2417_v32, %v1479_v20 }
 0x2df   : > { %v1488_v19 = vpop.permute.xlu1 %1487  ;;  %v1486_v2 = vpop.permute.xlu0 %1485 }
 0x2e0   : > { %v1613_v3 = vsel %vm1607_vm9, %v1606_v25, %v1488_v19 }
 0x2e3   : > { %v2579_v28 = vpop.permute.xlu1 %1568  ;;  %v1567_v15 = vpop.permute.xlu0 %1566 }
 0x2e7   : > { %v1475_v61 = vpop.permute.xlu1 %1474  ;;  %v1504_v51 = vpop.permute.xlu0 %1503 }
 0x2e8   : > { %v1600_v56 = vsel %vm1597_vm8, %v923_v24, %v1475_v61 }
 0x2e9   : > { %v1609_v48 = vsel %vm1607_vm9, %v1600_v56, %v1484_v22 }
 0x2eb   : > { %v1493_v29 = vpop.permute.xlu1 %1492  ;;  %v1585_v43 = vpop.permute.xlu0 %1584 }
 0x2ec   : > { %v1616_v4 = vsel %vm1614_vm10, %v1609_v48, %v1493_v29 }
 0x2ed   : > { %v1623_v5 = vsel %vm1621_vm11, %v1616_v4, %v1502_v30 }
 0x2ef   : > { %v1574_v39 = vpop.permute.xlu1 %1573  ;;  %v1522_v9 = vpop.permute.xlu0 %1521 }
 0x2f0   : > { %v1679_v21 = vsel %vm1628_vm12, %v1673_v12, %v1574_v39 }
 0x2f1   : > { %v1685_v46 = vsel %vm1635_vm13, %v1679_v21, %v1583_v37 }
 0x2f3   : > { %v1511_v13 = vpop.permute.xlu1 %1510  ;;  %v1540_v34 = vpop.permute.xlu0 %1539 }
 0x2f4   : > { %v1630_v24 = vsel %vm1628_vm12, %v1623_v5, %v1511_v13  ;;  %v1656_v0 = vsel %vm1597_vm8, %v1199_v44, %v1540_v34 }
 0x2f5   : > { %v1637_v45 = vsel %vm1635_vm13, %v1630_v24, %v1520_v62  ;;  %v1663_v10 = vsel %vm1607_vm9, %v1656_v0, %v1549_v38  ;;  %v1759_v24 = vld [vmem:[%s2666_s6] sm:$0xf] }
 0x2f7   : > { %v1592_v41 = vpop.permute.xlu1 %1591  ;;  %v1477_v36 = vpop.permute.xlu0 %1476 }
 0x2f8   : > { %v1691_v6 = vsel %vm1642_vm14, %v1685_v46, %v1592_v41  ;;  %v1603_v27 = vsel %vm1597_vm8, %v1195_v11, %v1477_v36  ;;  %v1749_v36 = vld [vmem:[%s2665_s5] sm:$0xf] }
 0x2f9   : > { %1708 = vmatprep.subr.bf16.mxu0 %v1691_v6  ;;  %v1611_v55 = vsel %vm1607_vm9, %v1603_v27, %v1486_v2 }
 0x2fb   : > { %v1529_v52 = vpop.permute.xlu1 %1528  ;;  %v1558_v23 = vpop.permute.xlu0 %1557 }
 0x2fc   : > { %v1644_v58 = vsel %vm1642_vm14, %v1637_v45, %v1529_v52  ;;  %v1669_v17 = vsel %vm1614_vm10, %v1663_v10, %v1558_v23 }
 0x2fd   : > { %1709 = vmatpush1.bf16.msra.mxu0 %v1644_v58  ;;  %v1675_v35 = vsel %vm1621_vm11, %v1669_v17, %v1567_v15 }
 0x2ff   : > { %v1542_v53 = vpop.permute.xlu1 %1541  ;;  %v1495_v57 = vpop.permute.xlu0 %1494 }
 0x300   : > { %v1618_v33 = vsel %vm1614_vm10, %v1611_v55, %v1495_v57  ;;  %v1659_v20 = vsel %vm1597_vm8, %v2536_v40, %v1542_v53 }
 0x301   : > { %v1625_v11 = vsel %vm1621_vm11, %v1618_v33, %v1504_v51 }
 0x303   : > { %v1551_v60 = vpop.permute.xlu1 %1550  ;;  %v1576_v8 = vpop.permute.xlu0 %1575 }
 0x304   : > { %v1681_v54 = vsel %vm1628_vm12, %v1675_v35, %v1576_v8  ;;  %v1665_v38 = vsel %vm1607_vm9, %v1659_v20, %v1551_v60 }
 0x305   : > { %v1687_v22 = vsel %vm1635_vm13, %v1681_v54, %v1585_v43 }
 0x307   : > { %v1497_v44 = vpop.permute.xlu1 %1496  ;;  %v1513_v14 = vpop.permute.xlu0 %1512 }
 0x308   : > { %v1620_v42 = vsel %vm1614_vm10, %v1613_v3, %v1497_v44  ;;  %v1632_v18 = vsel %vm1628_vm12, %v1625_v11, %v1513_v14 }
 0x309   : > { %v1627_v7 = vsel %vm1621_vm11, %v1620_v42, %v2573_v49  ;;  %v1639_v49 = vsel %vm1635_vm13, %v1632_v18, %v1522_v9 }
 0x30a   : > { %v1634_v32 = vsel %vm1628_vm12, %v1627_v7, %v2575_v16 }
 0x30b   : > { %v1578_v63 = vpop.permute.xlu1 %1577  ;;  %v1594_v50 = vpop.permute.xlu0 %1593  ;;  %v1641_v30 = vsel %vm1635_vm13, %v1634_v32, %v2577_v26 }
 0x30c   : > { %v1694_v37 = vsel %vm1642_vm14, %v1687_v22, %v1594_v50 }
 0x30d   : > { %1710 = vmatprep.subr.bf16.mxu0 %v1694_v37 }
 0x30f   : > { %v1587_v1 = vpop.permute.xlu1 %1586  ;;  %v1531_v62 = vpop.permute.xlu0 %1530 }
 0x310   : > { %v1647_v16 = vsel %vm1642_vm14, %v1639_v49, %v1531_v62 }
 0x311   : > { %1711 = vmatpush1.bf16.msra.mxu0 %v1647_v16 }
 0x313   : > { %v1560_v19 = vpop.permute.xlu1 %1559  ;;  %v1533_v2 = vpop.permute.xlu0 %1532 }
 0x314   : > { %v1671_v26 = vsel %vm1614_vm10, %v1665_v38, %v1560_v19  ;;  %v1650_v61 = vsel %vm1642_vm14, %v1641_v30, %v1533_v2 }
 0x315   : > { %v1677_v15 = vsel %vm1621_vm11, %v1671_v26, %v2579_v28  ;;  %v1704_v40 = vsel %vm1703_vm15, %v1650_v61, 0 }
 0x316   : > { %v1683_v51 = vsel %vm1628_vm12, %v1677_v15, %v1578_v63 }
 0x317   : > { %v1689_v29 = vsel %vm1635_vm13, %v1683_v51, %v1587_v1  ;;  %v1596_v43 = vpop.permute.xlu1 %1595 }
 0x318   : > { %v1697_v47 = vsel %vm1642_vm14, %v1689_v29, %v1596_v43 }
 0x319   : > { %1851 = vmatprep.subr.msk.bf16.mxu0 %vm1703_vm15, %v1697_v47 }
 0x31a   : > { %1713 = vmatpush1.bf16.msra.mxu0 %v1704_v40 }
 0x31d   : > { %1852 = vmatmul.mubr.msk.bf16.vlgmr.msra.gmra.mrb[0].mxu0 %vm1699_vm0, %v1698_v59 }
 0x3f0   : > { %v1742_v28 = vpop.f32.mrb[0].mxu0 }
 0x3f1   : > { %v1760_v39 = vmul.f32 %v1742_v28, %v1742_v28  ;;  %v1744_v9 = vpop.f32.mrb[1].mxu0  ;;  %v1751_v31 = vsel %vm1750_vm1, %v1742_v28, 0.0 }
 0x3f2   : > { %v1761_v56 = vmul.f32 %v1744_v9, %v1744_v9  ;;  %v1771_v48 = vcombine.low %v1742_v28, %v1744_v9  ;;  %v1746_v12 = vpop.f32.mrb[2].mxu0  ;;  %v1752_v13 = vsel %vm1750_vm1, %v1744_v9, 0.0 }
 0x3f3   : > { %v1747_v34 = vpop.f32.mrb[3].mxu0  ;;  %v1753_v4 = vadd.f32 %v1752_v13, %v1751_v31  ;;  %v1762_v21 = vsel %vm1750_vm1, %v1760_v39, 0.0 }
 0x3f4   : > { %1773 = vst [vmem:[%s1953_s30] sm:$0xff] %v1771_v48  ;;  %v1763_v5 = vsel %vm1750_vm1, %v1761_v56, 0.0 }
 0x3f5   : > { %1754 = vadd.xlane.f32.xlu0 %v1753_v4  ;;  %v1764_v41 = vadd.f32 %v1763_v5, %v1762_v21 }
 0x3f7   : > { %1765 = vadd.xlane.f32.xlu1 %v1764_v41 }
 0x482   : > { %v1755_v46 = vpop.xlane.xlu0 %1754 }
 0x483   : > { %v1756_v6 = vadd.f32 %v1755_v46, %v1749_v36 }
 0x484   : > { %v1766_v52 = vpop.xlane.xlu1 %1765 }
 0x485   : > { %1758 = vst.msk [vmem:[%s2665_s5] sm:$0xf] %vm1757_vm2, %v1756_v6  ;;  %v1767_v23 = vadd.f32 %v1766_v52, %v1759_v24 }
 0x487   : > { %1768 = vst.msk [vmem:[%s2666_s6] sm:$0xf] %vm1757_vm2, %v1767_v23 }
 0x488 PF: > { %s17_s21 = sadd.s32 1, %s1887_s21  }
 0x489   : > { %p14_p5 = scmp.ge.s32.totalorder %s17_s21, 4  }
 0x48b   :  { %16 = sbr.rel (!%p14_p5) target bundleno = 1 (0x1), region = 86 }

</bundles_post_ra>
